<compile_context>
chip_gen: v7x
topology: tpu7x:2x2x1
jax: 0.10.0
libtpu: 0.0.40
codegen_flags: <defaults>
</compile_context>

<pallas_src>
import functools

import jax
import jax.numpy as jnp
from jax.experimental import pallas as pl
from jax.experimental.pallas import tpu as pltpu


def _round_up(x, m):
    return ((x + m - 1) // m) * m


# ---------------------------------------------------------------------------
# Feature probe: single-buffering (pl.Buffered(1)) of grid-invariant operands.
# Falls back to default double buffering if unsupported by this jax build.
# ---------------------------------------------------------------------------
@functools.lru_cache(maxsize=None)
def _single_buffering_supported():
    try:
        def k(x_ref, o_ref):
            o_ref[...] = x_ref[...]

        x = jnp.zeros((8, 128), jnp.float32)
        out = pl.pallas_call(
            k,
            out_shape=jax.ShapeDtypeStruct((8, 128), jnp.float32),
            grid=(1,),
            in_specs=[pl.BlockSpec((8, 128), lambda i: (0, 0),
                                   pipeline_mode=pl.Buffered(1))],
            out_specs=pl.BlockSpec((8, 128), lambda i: (0, 0)),
        )(x)
        jax.block_until_ready(out)
        return True
    except Exception:
        return False


def _invariant_spec(block_shape, index_map):
    """BlockSpec for operands whose block index never changes along the
    pipelined grid axes -> a second buffer is pure VMEM waste."""
    if _single_buffering_supported():
        return pl.BlockSpec(block_shape, index_map,
                            pipeline_mode=pl.Buffered(1))
    return pl.BlockSpec(block_shape, index_map)


# ---------------------------------------------------------------------------
# Kernel
# ---------------------------------------------------------------------------
def _mlp_kernel(*refs, n_hidden):
    if n_hidden > 0:
        (x_ref, w_in_ref, b_in_ref, w_hid_ref, b_hid_ref,
         w_out_ref, b_out_ref, o_ref, h_ref) = refs
    else:
        (x_ref, w_in_ref, b_in_ref,
         w_out_ref, b_out_ref, o_ref, h_ref) = refs
        w_hid_ref = b_hid_ref = None

    # Hidden activations are computed once per (branch, batch-tile) and kept
    # in VMEM scratch; every OUT tile only pays for its own output matmul.
    @pl.when(pl.program_id(2) == 0)
    def _():
        # bf16 only at the MXU inputs, f32 accumulate + f32 bias/relu.
        x = x_ref[...].astype(jnp.bfloat16)
        h = jnp.dot(x, w_in_ref[...], preferred_element_type=jnp.float32)
        h = jnp.maximum(h + b_in_ref[...], 0.0)
        for l in range(n_hidden):  # statically unrolled
            h = jnp.dot(h.astype(jnp.bfloat16), w_hid_ref[l],
                        preferred_element_type=jnp.float32)
            h = jnp.maximum(h + b_hid_ref[l], 0.0)
        h_ref[...] = h

    out = jnp.dot(h_ref[...].astype(jnp.bfloat16), w_out_ref[...],
                  preferred_element_type=jnp.float32)
    o_ref[...] = jnp.tanh(out + b_out_ref[...]).astype(o_ref.dtype)


# ---------------------------------------------------------------------------
# pallas_call wrapper: both branches, full batch tile, optional OUT tiling
# ---------------------------------------------------------------------------
def _fused_mlp_call(x, w_in, b_in, w_hid, b_hid, w_out, b_out, *,
                    n_hidden, tile_b=512, tile_out=2048):
    """x: (2, B, H) f32; weights stacked along a leading axis of 2 (alpha,
    beta), matmul weights bf16, biases f32. Returns (2, B, OUT) f32."""
    NB, B, H = x.shape
    HHp = w_in.shape[-1]
    OUT = w_out.shape[-1]

    # Batch tile: cover the whole batch in one step when possible so the
    # ~0.35us fixed per-step overhead is amortized over all rows and the
    # branch axis (size 2) maps one branch per TensorCore on v7x.
    if tile_b >= B:
        tile_b = B
    else:
        tile_b = max(8, (tile_b // 8) * 8)          # sublane-aligned tile
    nb = pl.cdiv(B, tile_b)

    # OUT tiling keeps the (HHp, tile_out) bf16 weight + (tile_b, tile_out)
    # f32 output buffers within v7x's 64 MiB VMEM for large hidden*input.
    if tile_out >= OUT:
        tile_out = OUT
    else:
        tile_out = max(128, (tile_out // 128) * 128)  # lane-dense tile
    no = pl.cdiv(OUT, tile_out)

    inv = _invariant_spec
    # w_out / b_out are only grid-invariant when there is a single OUT tile.
    wout = _invariant_spec if no == 1 else pl.BlockSpec

    in_specs = [
        pl.BlockSpec((None, tile_b, H), lambda br, i, o: (br, i, 0)),
        inv((None, H, HHp), lambda br, i, o: (br, 0, 0)),
        inv((None, 1, HHp), lambda br, i, o: (br, 0, 0)),
    ]
    args = [x, w_in, b_in]
    n_hid_stack = 0
    if n_hidden > 0:
        n_hid_stack = w_hid.shape[1]
        in_specs += [
            inv((None, n_hid_stack, HHp, HHp), lambda br, i, o: (br, 0, 0, 0)),
            inv((None, n_hid_stack, 1, HHp), lambda br, i, o: (br, 0, 0, 0)),
        ]
        args += [w_hid, b_hid]
    in_specs += [
        wout((None, HHp, tile_out), lambda br, i, o: (br, 0, o)),
        wout((None, 1, tile_out), lambda br, i, o: (br, 0, o)),
    ]
    args += [w_out, b_out]

    # VMEM budget from the actual block sizes (double-buffered where the block
    # index varies), never below the 32 MiB scoped default, capped at v7x's
    # 64 MiB physical VMEM.
    vmem_bytes = (
        2 * tile_b * H * 4                     # x (double buffered)
        + H * HHp * 2 + HHp * 4                # w_in / b_in (single)
        + n_hid_stack * HHp * HHp * 2          # w_hid (single)
        + n_hid_stack * HHp * 4                # b_hid (single)
        + 2 * HHp * tile_out * 2               # w_out
        + 2 * tile_out * 4                     # b_out
        + 2 * tile_b * tile_out * 4            # output (double buffered)
        + tile_b * HHp * 4)                    # h scratch
    vmem_limit = int(min(64 * 1024 * 1024,
                         max(32 * 1024 * 1024, 2 * vmem_bytes)))

    flops = 2 * NB * B * (H * HHp + n_hidden * HHp * HHp + HHp * OUT)
    transcendentals = NB * B * OUT             # tanh on every output element
    bytes_accessed = (x.size * 4 + w_in.size * 2 + b_in.size * 4
                      + (w_hid.size * 2 + b_hid.size * 4 if n_hidden > 0 else 0)
                      + w_out.size * 2 + b_out.size * 4
                      + NB * B * OUT * 4)

    kernel = functools.partial(_mlp_kernel, n_hidden=n_hidden)

    return pl.pallas_call(
        kernel,
        out_shape=jax.ShapeDtypeStruct((NB, B, OUT), jnp.float32),
        grid_spec=pltpu.PrefetchScalarGridSpec(
            num_scalar_prefetch=0,
            grid=(NB, nb, no),  # branch x batch-tile x out-tile
            in_specs=in_specs,
            out_specs=pl.BlockSpec((None, tile_b, tile_out),
                                   lambda br, i, o: (br, i, o)),
            scratch_shapes=[pltpu.VMEM((tile_b, HHp), jnp.float32)],
        ),
        compiler_params=pltpu.CompilerParams(
            dimension_semantics=("parallel", "parallel", "arbitrary"),
            vmem_limit_bytes=vmem_limit),
        cost_estimate=pl.CostEstimate(
            flops=int(flops),
            transcendentals=int(transcendentals),
            bytes_accessed=int(bytes_accessed)),
    )(*args)


# ---------------------------------------------------------------------------
# Parameter init (torch nn.Linear style), alpha/beta stacked on leading axis 2
# ---------------------------------------------------------------------------
def _init_linear(key, fan_in, fan_out):
    """Torch-style Linear init: U(-1/sqrt(fan_in), 1/sqrt(fan_in)).
    Weight returned as (fan_in, fan_out) so the kernel computes x @ W + b."""
    kw, kb = jax.random.split(key)
    bound = 1.0 / jnp.sqrt(jnp.float32(fan_in))
    w = jax.random.uniform(kw, (fan_in, fan_out), jnp.float32, -bound, bound)
    b = jax.random.uniform(kb, (1, fan_out), jnp.float32, -bound, bound)
    return w, b


def init_mlp_cde_func_params(key, input_size, hidden_size,
                             hidden_hidden_size, n_layers):
    """Float32 params; alpha/beta stacked along a leading axis of 2. The
    'factors' branch is initialized for parity with torch but never used in
    forward (same as the torch module)."""
    out_dim = input_size * hidden_size
    n_hidden = n_layers - 1

    def one_branch(key):
        key, k_in, k_out = jax.random.split(key, 3)
        w_in, b_in = _init_linear(k_in, hidden_size, hidden_hidden_size)
        w_hs, b_hs = [], []
        for _ in range(n_hidden):
            key, kh = jax.random.split(key)
            w, b = _init_linear(kh, hidden_hidden_size, hidden_hidden_size)
            w_hs.append(w)
            b_hs.append(b)
        w_hid = (jnp.stack(w_hs) if n_hidden > 0 else
                 jnp.zeros((0, hidden_hidden_size, hidden_hidden_size),
                           jnp.float32))
        b_hid = (jnp.stack(b_hs) if n_hidden > 0 else
                 jnp.zeros((0, 1, hidden_hidden_size), jnp.float32))
        w_out, b_out = _init_linear(k_out, hidden_hidden_size, out_dim)
        return dict(w_in=w_in, b_in=b_in, w_hid=w_hid, b_hid=b_hid,
                    w_out=w_out, b_out=b_out)

    ka, kb_, kf = jax.random.split(key, 3)
    alpha = one_branch(ka)
    beta = one_branch(kb_)
    _factors = one_branch(kf)  # unused in forward (parity with torch module)

    stacked = {k: jnp.stack([alpha[k], beta[k]]) for k in alpha}
    stacked["n_hidden"] = n_hidden
    return stacked


def prepare_kernel_params(p, *, pad_hh_to=128):
    """Cast matmul weights to bf16 and zero-pad hidden_hidden_size up to a
    multiple of `pad_hh_to` (lane-dense hidden activations, MXU N fill).
    The padding is mathematically exact: padded biases are 0 so relu(0)=0,
    and padded weight rows/cols are 0."""
    n_hidden = p["n_hidden"]
    HH = p["w_in"].shape[-1]
    HHp = _round_up(HH, pad_hh_to) if pad_hh_to else HH
    pad = HHp - HH

    def pad_last(a, n):
        if n == 0:
            return a
        widths = [(0, 0)] * (a.ndim - 1) + [(0, n)]
        return jnp.pad(a, widths)

    w_in = pad_last(p["w_in"], pad)            # (2, H, HHp)
    b_in = pad_last(p["b_in"], pad)            # (2, 1, HHp)
    w_out = p["w_out"]
    if pad:
        w_out = jnp.pad(w_out, [(0, 0), (0, pad), (0, 0)])   # (2, HHp, OUT)

    out = dict(
        w_in=w_in.astype(jnp.bfloat16),
        b_in=b_in,
        w_out=w_out.astype(jnp.bfloat16),
        b_out=p["b_out"],
        n_hidden=n_hidden,
    )
    if n_hidden > 0:
        w_hid, b_hid = p["w_hid"], p["b_hid"]
        if pad:
            w_hid = jnp.pad(w_hid, [(0, 0), (0, 0), (0, pad), (0, pad)])
            b_hid = pad_last(b_hid, pad)
        out["w_hid"] = w_hid.astype(jnp.bfloat16)   # (2, n_hidden, HHp, HHp)
        out["b_hid"] = b_hid                        # (2, n_hidden, 1, HHp)
    else:
        # No dummy layer: the n_hidden==0 pallas_call simply omits these.
        out["w_hid"] = None
        out["b_hid"] = None
    return out


# ---------------------------------------------------------------------------
# Forward (matches MLPCDEFunc.forward semantics; t is unused)
# ---------------------------------------------------------------------------
def mlp_cde_func_forward_stacked(t, gamma_stacked, kparams, *, input_size,
                                 hidden_size, tile_b=512, tile_out=2048):
    """Preferred entry point inside a CDE solver loop: takes alpha/beta
    already stacked as (2, B, hidden_size) and returns (2, B, hidden_size,
    input_size), avoiding per-step jnp.stack / slice HBM traffic."""
    del t  # unused, as in the torch module
    B = gamma_stacked.shape[1]
    y = _fused_mlp_call(gamma_stacked,
                        kparams["w_in"], kparams["b_in"],
                        kparams["w_hid"], kparams["b_hid"],
                        kparams["w_out"], kparams["b_out"],
                        n_hidden=kparams["n_hidden"],
                        tile_b=tile_b, tile_out=tile_out)
    # Reshape stays in the wrapper: kernel stores remain lane-dense (OUT is a
    # multiple of 128), never input_size-wide masked partial stores.
    return y.reshape(2, B, hidden_size, input_size)


def mlp_cde_func_forward(t, gamma, kparams, *, input_size, hidden_size,
                         tile_b=512, tile_out=2048):
    alpha_in, beta_in = gamma          # each (B, hidden_size)
    y = mlp_cde_func_forward_stacked(
        t, jnp.stack([alpha_in, beta_in]), kparams,
        input_size=input_size, hidden_size=hidden_size,
        tile_b=tile_b, tile_out=tile_out)
    return y[0], y[1]


# ---------------------------------------------------------------------------
# Pure-JAX references for validation
# ---------------------------------------------------------------------------
def _reference_forward(gamma, params_f32, *, input_size, hidden_size,
                       match_bf16):
    cast = ((lambda a: a.astype(jnp.bfloat16)) if match_bf16
            else (lambda a: a))
    n_hidden = params_f32["n_hidden"]

    def branch(x, br):
        h = jnp.dot(cast(x), cast(params_f32["w_in"][br]),
                    preferred_element_type=jnp.float32)
        h = jnp.maximum(h + params_f32["b_in"][br], 0.0)
        for l in range(n_hidden):
            h = jnp.dot(cast(h), cast(params_f32["w_hid"][br, l]),
                        preferred_element_type=jnp.float32)
            h = jnp.maximum(h + params_f32["b_hid"][br, l], 0.0)
        y = jnp.dot(cast(h), cast(params_f32["w_out"][br]),
                    preferred_element_type=jnp.float32)
        y = jnp.tanh(y + params_f32["b_out"][br])
        return y.reshape(y.shape[0], hidden_size, input_size)

    a_in, b_in = gamma
    return branch(a_in, 0), branch(b_in, 1)


if __name__ == "__main__":
    # Shapes implied by the module's forward: gamma = (alpha, beta), each
    # (batch, hidden_size); output (batch, hidden_size, input_size).
    batch = 256
    input_size = 4
    hidden_size = 32
    hidden_hidden_size = 64
    n_layers = 3  # => 2 hidden linears per branch

    key = jax.random.PRNGKey(0)
    key, ka, kb = jax.random.split(key, 3)
    alpha_in = jax.random.normal(ka, (batch, hidden_size), jnp.float32)
    beta_in = jax.random.normal(kb, (batch, hidden_size), jnp.float32)
    gamma = (alpha_in, beta_in)

    params_f32 = init_mlp_cde_func_params(
        key, input_size, hidden_size, hidden_hidden_size, n_layers)
    kparams = prepare_kernel_params(params_f32)

    t = jnp.float32(0.0)  # unused by forward, kept for signature parity
    alpha_out, beta_out = mlp_cde_func_forward(
        t, gamma, kparams, input_size=input_size, hidden_size=hidden_size)
    jax.block_until_ready((alpha_out, beta_out))
    assert alpha_out.shape == (batch, hidden_size, input_size)
    assert beta_out.shape == (batch, hidden_size, input_size)

    # (1) Tight check against a precision-matched (bf16 matmul / f32 acc) ref.
    ref_a, ref_b = _reference_forward(
        gamma, params_f32, input_size=input_size, hidden_size=hidden_size,
        match_bf16=True)
    assert jnp.allclose(alpha_out, ref_a, atol=1e-3, rtol=1e-3)
    assert jnp.allclose(beta_out, ref_b, atol=1e-3, rtol=1e-3)

    # (2) Loose semantic check against pure-f32 torch-equivalent math.
    ref_a32, ref_b32 = _reference_forward(
        gamma, params_f32, input_size=input_size, hidden_size=hidden_size,
        match_bf16=False)
    assert jnp.allclose(alpha_out, ref_a32, atol=3e-2, rtol=3e-2)
    assert jnp.allclose(beta_out, ref_b32, atol=3e-2, rtol=3e-2)

    # (3) Ragged batch (B % tile_b != 0): last tile computes on stale VMEM
    #     rows but only valid rows are written back.
    batch_r = 200
    kr1, kr2 = jax.random.split(jax.random.PRNGKey(1))
    gamma_r = (jax.random.normal(kr1, (batch_r, hidden_size), jnp.float32),
               jax.random.normal(kr2, (batch_r, hidden_size), jnp.float32))
    a_r, b_r = mlp_cde_func_forward(
        t, gamma_r, kparams, input_size=input_size, hidden_size=hidden_size,
        tile_b=128)
    r_ra, r_rb = _reference_forward(
        gamma_r, params_f32, input_size=input_size, hidden_size=hidden_size,
        match_bf16=True)
    assert a_r.shape == (batch_r, hidden_size, input_size)
    assert jnp.allclose(a_r, r_ra, atol=1e-3, rtol=1e-3)
    assert jnp.allclose(b_r, r_rb, atol=1e-3, rtol=1e-3)

    # (4) n_layers == 1: variant pallas_call with no hidden weights at all.
    params1 = init_mlp_cde_func_params(
        jax.random.PRNGKey(2), input_size, hidden_size, hidden_hidden_size, 1)
    kparams1 = prepare_kernel_params(params1)
    a1, b1 = mlp_cde_func_forward(
        t, gamma, kparams1, input_size=input_size, hidden_size=hidden_size)
    r1a, r1b = _reference_forward(
        gamma, params1, input_size=input_size, hidden_size=hidden_size,
        match_bf16=True)
    assert jnp.allclose(a1, r1a, atol=1e-3, rtol=1e-3)
    assert jnp.allclose(b1, r1b, atol=1e-3, rtol=1e-3)

    print("KERNEL_OK")
</pallas_src>

<mosaic_0001>
module attributes {stable_mosaic.version = 11 : i64} {
  func.func @k(%arg0: i32, %arg1: memref<8x128xf32, #tpu.memory_space<vmem>>, %arg2: memref<8x128xf32, #tpu.memory_space<vmem>>) attributes {dimension_semantics = [#tpu.dimension_semantics<arbitrary>], iteration_bounds = array<i64: 1>, scalar_prefetch = 0 : i64, scratch_operands = 0 : i64, tpu.core_type = #tpu.core_type<tc>, window_params = [{pipeline_mode = #tpu.pipeline_mode<synchronous>, transform_indices = @transform_0, window_bounds = array<i64: 8, 128>}, {pipeline_mode = #tpu.pipeline_mode<synchronous>, transform_indices = @transform_1, window_bounds = array<i64: 8, 128>}]} {
    %c0 = arith.constant 0 : index
    %c0_0 = arith.constant 0 : index
    %0 = vector.load %arg1[%c0, %c0_0] : memref<8x128xf32, #tpu.memory_space<vmem>>, vector<8x128xf32>
    %c0_1 = arith.constant 0 : index
    %c0_2 = arith.constant 0 : index
    %1 = vector.load %arg2[%c0_1, %c0_2] : memref<8x128xf32, #tpu.memory_space<vmem>>, vector<8x128xf32>
    tpu.vector_store %arg2[%c0_1, %c0_2], %0 {strides = array<i32>} : memref<8x128xf32, #tpu.memory_space<vmem>>, vector<8x128xf32>,
    return
  }
  func.func @transform_0(%arg0: i32) -> (i32, i32) {
    %c0_i32 = arith.constant 0 : i32
    %c0_i32_0 = arith.constant 0 : i32
    %c0_i32_1 = arith.constant 0 : i32
    return %c0_i32, %c0_i32_0 : i32, i32
  }
  func.func @transform_1(%arg0: i32) -> (i32, i32) {
    %c0_i32 = arith.constant 0 : i32
    %c0_i32_0 = arith.constant 0 : i32
    %c0_i32_1 = arith.constant 0 : i32
    return %c0_i32, %c0_i32_0 : i32, i32
  }
}

module attributes {stable_mosaic.version = 11 : i64} {
  func.func @_mlp_kernel(%arg0: i32, %arg1: i32, %arg2: i32, %arg3: memref<1x256x32xf32, #tpu.memory_space<vmem>>, %arg4: memref<1x32x128xbf16, #tpu.memory_space<vmem>>, %arg5: memref<1x1x128xf32, #tpu.memory_space<vmem>>, %arg6: memref<1x2x128x128xbf16, #tpu.memory_space<vmem>>, %arg7: memref<1x2x1x128xf32, #tpu.memory_space<vmem>>, %arg8: memref<1x128x128xbf16, #tpu.memory_space<vmem>>, %arg9: memref<1x1x128xf32, #tpu.memory_space<vmem>>, %arg10: memref<1x256x128xf32, #tpu.memory_space<vmem>>, %arg11: memref<256x128xf32, #tpu.memory_space<vmem>>) attributes {dimension_semantics = [#tpu.dimension_semantics<parallel>, #tpu.dimension_semantics<parallel>, #tpu.dimension_semantics<arbitrary>], iteration_bounds = array<i64: 2, 1, 1>, scalar_prefetch = 0 : i64, scratch_operands = 1 : i64, tpu.core_type = #tpu.core_type<tc>, window_params = [{transform_indices = @transform_0, window_bounds = array<i64: 1, 256, 32>}, {transform_indices = @transform_1, window_bounds = array<i64: 1, 32, 128>}, {transform_indices = @transform_2, window_bounds = array<i64: 1, 1, 128>}, {transform_indices = @transform_3, window_bounds = array<i64: 1, 2, 128, 128>}, {transform_indices = @transform_4, window_bounds = array<i64: 1, 2, 1, 128>}, {transform_indices = @transform_5, window_bounds = array<i64: 1, 128, 128>}, {transform_indices = @transform_6, window_bounds = array<i64: 1, 1, 128>}, {transform_indices = @transform_7, window_bounds = array<i64: 1, 256, 128>}]} {
    %c0_i32 = arith.constant 0 : i32
    %0 = arith.cmpi eq, %arg2, %c0_i32 : i32
    %1 = arith.extui %0 : i1 to i32
    %c0_i32_0 = arith.constant 0 : i32
    %2 = arith.cmpi ne, %1, %c0_i32_0 : i32
    scf.if %2 {
      %c0_11 = arith.constant 0 : index
      %c0_12 = arith.constant 0 : index
      %c0_13 = arith.constant 0 : index
      %16 = vector.load %arg3[%c0_11, %c0_12, %c0_13] : memref<1x256x32xf32, #tpu.memory_space<vmem>>, vector<1x256x32xf32>
      %17 = vector.shape_cast %16 : vector<1x256x32xf32> to vector<256x32xf32>
      %18 = arith.truncf %17 : vector<256x32xf32> to vector<256x32xbf16>
      %c0_14 = arith.constant 0 : index
      %c0_15 = arith.constant 0 : index
      %c0_16 = arith.constant 0 : index
      %19 = vector.load %arg4[%c0_14, %c0_15, %c0_16] : memref<1x32x128xbf16, #tpu.memory_space<vmem>>, vector<1x32x128xbf16>
      %20 = vector.shape_cast %19 : vector<1x32x128xbf16> to vector<32x128xbf16>
      %cst_17 = arith.constant dense<0.000000e+00> : vector<256x128xf32>
      %21 = tpu.matmul %18, %20, %cst_17 {dimension_numbers = #tpu.dot_dimension_numbers<[1], [0], [0], [1], [0, 0, 1, 1], [], []>} : vector<256x32xbf16>, vector<32x128xbf16>, vector<256x128xf32> -> vector<256x128xf32>
      %c0_18 = arith.constant 0 : index
      %c0_19 = arith.constant 0 : index
      %c0_20 = arith.constant 0 : index
      %22 = vector.load %arg5[%c0_18, %c0_19, %c0_20] : memref<1x1x128xf32, #tpu.memory_space<vmem>>, vector<1x1x128xf32>
      %23 = vector.shape_cast %22 : vector<1x1x128xf32> to vector<1x128xf32>
      %24 = vector.broadcast %23 : vector<1x128xf32> to vector<256x128xf32>
      %25 = arith.addf %21, %24 : vector<256x128xf32>
      %cst_21 = arith.constant 0.000000e+00 : f32
      %26 = vector.broadcast %cst_21 : f32 to vector<256x128xf32>
      %27 = arith.maximumf %25, %26 : vector<256x128xf32>
      %28 = arith.truncf %27 : vector<256x128xf32> to vector<256x128xbf16>
      %c0_22 = arith.constant 0 : index
      %c0_23 = arith.constant 0 : index
      %c0_24 = arith.constant 0 : index
      %c0_25 = arith.constant 0 : index
      %29 = vector.load %arg6[%c0_22, %c0_23, %c0_24, %c0_25] : memref<1x2x128x128xbf16, #tpu.memory_space<vmem>>, vector<1x1x128x128xbf16>
      %30 = vector.shape_cast %29 : vector<1x1x128x128xbf16> to vector<128x128xbf16>
      %cst_26 = arith.constant dense<0.000000e+00> : vector<256x128xf32>
      %31 = tpu.matmul %28, %30, %cst_26 {dimension_numbers = #tpu.dot_dimension_numbers<[1], [0], [0], [1], [0, 0, 1, 1], [], []>} : vector<256x128xbf16>, vector<128x128xbf16>, vector<256x128xf32> -> vector<256x128xf32>
      %c0_27 = arith.constant 0 : index
      %c0_28 = arith.constant 0 : index
      %c0_29 = arith.constant 0 : index
      %c0_30 = arith.constant 0 : index
      %32 = vector.load %arg7[%c0_27, %c0_28, %c0_29, %c0_30] : memref<1x2x1x128xf32, #tpu.memory_space<vmem>>, vector<1x1x1x128xf32>
      %33 = vector.shape_cast %32 : vector<1x1x1x128xf32> to vector<1x128xf32>
      %34 = vector.broadcast %33 : vector<1x128xf32> to vector<256x128xf32>
      %35 = arith.addf %31, %34 : vector<256x128xf32>
      %cst_31 = arith.constant 0.000000e+00 : f32
      %36 = vector.broadcast %cst_31 : f32 to vector<256x128xf32>
      %37 = arith.maximumf %35, %36 : vector<256x128xf32>
      %38 = arith.truncf %37 : vector<256x128xf32> to vector<256x128xbf16>
      %c0_32 = arith.constant 0 : index
      %c1 = arith.constant 1 : index
      %c0_33 = arith.constant 0 : index
      %c0_34 = arith.constant 0 : index
      %39 = vector.load %arg6[%c0_32, %c1, %c0_33, %c0_34] : memref<1x2x128x128xbf16, #tpu.memory_space<vmem>>, vector<1x1x128x128xbf16>
      %40 = vector.shape_cast %39 : vector<1x1x128x128xbf16> to vector<128x128xbf16>
      %cst_35 = arith.constant dense<0.000000e+00> : vector<256x128xf32>
      %41 = tpu.matmul %38, %40, %cst_35 {dimension_numbers = #tpu.dot_dimension_numbers<[1], [0], [0], [1], [0, 0, 1, 1], [], []>} : vector<256x128xbf16>, vector<128x128xbf16>, vector<256x128xf32> -> vector<256x128xf32>
      %c0_36 = arith.constant 0 : index
      %c1_37 = arith.constant 1 : index
      %c0_38 = arith.constant 0 : index
      %c0_39 = arith.constant 0 : index
      %42 = vector.load %arg7[%c0_36, %c1_37, %c0_38, %c0_39] : memref<1x2x1x128xf32, #tpu.memory_space<vmem>>, vector<1x1x1x128xf32>
      %43 = vector.shape_cast %42 : vector<1x1x1x128xf32> to vector<1x128xf32>
      %44 = vector.broadcast %43 : vector<1x128xf32> to vector<256x128xf32>
      %45 = arith.addf %41, %44 : vector<256x128xf32>
      %cst_40 = arith.constant 0.000000e+00 : f32
      %46 = vector.broadcast %cst_40 : f32 to vector<256x128xf32>
      %47 = arith.maximumf %45, %46 : vector<256x128xf32>
      %c0_41 = arith.constant 0 : index
      %c0_42 = arith.constant 0 : index
      %48 = vector.load %arg11[%c0_41, %c0_42] : memref<256x128xf32, #tpu.memory_space<vmem>>, vector<256x128xf32>
      tpu.vector_store %arg11[%c0_41, %c0_42], %47 {strides = array<i32>} : memref<256x128xf32, #tpu.memory_space<vmem>>, vector<256x128xf32>,
    } else {
    }
    %c0 = arith.constant 0 : index
    %c0_1 = arith.constant 0 : index
    %3 = vector.load %arg11[%c0, %c0_1] : memref<256x128xf32, #tpu.memory_space<vmem>>, vector<256x128xf32>
    %4 = arith.truncf %3 : vector<256x128xf32> to vector<256x128xbf16>
    %c0_2 = arith.constant 0 : index
    %c0_3 = arith.constant 0 : index
    %c0_4 = arith.constant 0 : index
    %5 = vector.load %arg8[%c0_2, %c0_3, %c0_4] : memref<1x128x128xbf16, #tpu.memory_space<vmem>>, vector<1x128x128xbf16>
    %6 = vector.shape_cast %5 : vector<1x128x128xbf16> to vector<128x128xbf16>
    %cst = arith.constant dense<0.000000e+00> : vector<256x128xf32>
    %7 = tpu.matmul %4, %6, %cst {dimension_numbers = #tpu.dot_dimension_numbers<[1], [0], [0], [1], [0, 0, 1, 1], [], []>} : vector<256x128xbf16>, vector<128x128xbf16>, vector<256x128xf32> -> vector<256x128xf32>
    %c0_5 = arith.constant 0 : index
    %c0_6 = arith.constant 0 : index
    %c0_7 = arith.constant 0 : index
    %8 = vector.load %arg9[%c0_5, %c0_6, %c0_7] : memref<1x1x128xf32, #tpu.memory_space<vmem>>, vector<1x1x128xf32>
    %9 = vector.shape_cast %8 : vector<1x1x128xf32> to vector<1x128xf32>
    %10 = vector.broadcast %9 : vector<1x128xf32> to vector<256x128xf32>
    %11 = arith.addf %7, %10 : vector<256x128xf32>
    %12 = math.tanh %11 : vector<256x128xf32>
    %c0_8 = arith.constant 0 : index
    %c0_9 = arith.constant 0 : index
    %c0_10 = arith.constant 0 : index
    %13 = vector.load %arg10[%c0_8, %c0_9, %c0_10] : memref<1x256x128xf32, #tpu.memory_space<vmem>>, vector<1x256x128xf32>
    %14 = vector.shape_cast %13 : vector<1x256x128xf32> to vector<256x128xf32>
    %15 = vector.shape_cast %12 : vector<256x128xf32> to vector<1x256x128xf32>
    tpu.vector_store %arg10[%c0_8, %c0_9, %c0_10], %15 {strides = array<i32>} : memref<1x256x128xf32, #tpu.memory_space<vmem>>, vector<1x256x128xf32>,
    return
  }
  func.func @transform_0(%arg0: i32, %arg1: i32, %arg2: i32) -> (i32, i32, i32) {
    %c0_i32 = arith.constant 0 : i32
    %c0_i32_0 = arith.constant 0 : i32
    return %arg0, %arg1, %c0_i32 : i32, i32, i32
  }
  func.func @transform_1(%arg0: i32, %arg1: i32, %arg2: i32) -> (i32, i32, i32) {
    %c0_i32 = arith.constant 0 : i32
    %c0_i32_0 = arith.constant 0 : i32
    %c0_i32_1 = arith.constant 0 : i32
    return %arg0, %c0_i32, %c0_i32_0 : i32, i32, i32
  }
  func.func @transform_2(%arg0: i32, %arg1: i32, %arg2: i32) -> (i32, i32, i32) {
    %c0_i32 = arith.constant 0 : i32
    %c0_i32_0 = arith.constant 0 : i32
    %c0_i32_1 = arith.constant 0 : i32
    return %arg0, %c0_i32, %c0_i32_0 : i32, i32, i32
  }
  func.func @transform_3(%arg0: i32, %arg1: i32, %arg2: i32) -> (i32, i32, i32, i32) {
    %c0_i32 = arith.constant 0 : i32
    %c0_i32_0 = arith.constant 0 : i32
    %c0_i32_1 = arith.constant 0 : i32
    %c0_i32_2 = arith.constant 0 : i32
    return %arg0, %c0_i32, %c0_i32_0, %c0_i32_1 : i32, i32, i32, i32
  }
  func.func @transform_4(%arg0: i32, %arg1: i32, %arg2: i32) -> (i32, i32, i32, i32) {
    %c0_i32 = arith.constant 0 : i32
    %c0_i32_0 = arith.constant 0 : i32
    %c0_i32_1 = arith.constant 0 : i32
    %c0_i32_2 = arith.constant 0 : i32
    return %arg0, %c0_i32, %c0_i32_0, %c0_i32_1 : i32, i32, i32, i32
  }
  func.func @transform_5(%arg0: i32, %arg1: i32, %arg2: i32) -> (i32, i32, i32) {
    %c0_i32 = arith.constant 0 : i32
    %c0_i32_0 = arith.constant 0 : i32
    return %arg0, %c0_i32, %arg2 : i32, i32, i32
  }
  func.func @transform_6(%arg0: i32, %arg1: i32, %arg2: i32) -> (i32, i32, i32) {
    %c0_i32 = arith.constant 0 : i32
    %c0_i32_0 = arith.constant 0 : i32
    return %arg0, %c0_i32, %arg2 : i32, i32, i32
  }
  func.func @transform_7(%arg0: i32, %arg1: i32, %arg2: i32) -> (i32, i32, i32) {
    %c0_i32 = arith.constant 0 : i32
    return %arg0, %arg1, %arg2 : i32, i32, i32
  }
}

</mosaic_0001>

<bundles_post_ra>
// kernel: tpu_custom_call.1
= control target key start
LH: loop header
LB: loop body
LE: loop exit
PB: predicated region body
PF: predicated region fallthrough
CT: control target
= control target key end

     0   :  { %6 = vsyncpa [#allocation3], 0  ;;  %s124_s0 = inlined_call_operand.hbm [shape: f32[8,128], index: 0, kind: input, shape index: {}]   ;;  %s125_s1 = inlined_call_operand.hbm [shape: f32[8,128], index: 1, kind: output, shape index: {}]  }
   0x1   :  { %7 = vsyncpa [#allocation4], 0  ;;  %s88_s6 = smov [#allocation2]   ;;  %s40_s10 = scalar_lea.hbm %s124_s0, 128 }
   0x2   :  { %s14_s7 = sshll.u32 %s88_s6, 4  ;;  %p41_p0 = scmp.ne.s32.totalorder %s124_s0, %s40_s10  ;;  %s15_s7 = int_to_ptr.vmem [resolvable:$true] %s14_s7 }
   0x3   :  { %p44_p1 = scmp.lt.u32.totalorder %s40_s10, %s124_s0 }
   0x5   :  { %p46_p2 = pnand %p44_p1, %p41_p0 }
   0x7   :  { %49 = shalt.err (!%p46_p2)
}
   0x8   :  { %s50_s15 = scalar_lea.vmem %s15_s7, 128  ;;  %p55_p4 = scmp.lt.s32.totalorder %s15_s7, %s15_s7 }
   0x9   :  { %p51_p3 = scmp.ne.s32.totalorder %s15_s7, %s50_s15  ;;  %p56_p5 = scmp.lt.s32.totalorder %s50_s15, %s50_s15 }
   0xb   :  { %p57_p6 = por %p56_p5, %p55_p4 }
   0xd   :  { %p58_p7 = pnand %p57_p6, %p51_p3 }
   0xf   :  { %61 = shalt.err (!%p58_p7)
}
  0x10   :  { %17 = dma.hbm_to_vmem [thread:$0]  %s124_s0, 128, %s15_s7, [#allocation3]  }
  0x11   :  { %84 = dma.done.wait [#allocation3], 128  }
  0x12   :  { %85 = vsyncadd [#allocation3], 4294967168  ;;  %s89_s18 = smov [#allocation5]   ;;  %v21_v0 = vld [vmem:[#allocation2] sm:$0xff] }
  0x13   :  { %s29_s19 = sshll.u32 %s89_s18, 4  ;;  %22 = vst [vmem:[#allocation5] sm:$0xff] %v21_v0  ;;  %s30_s19 = int_to_ptr.vmem [resolvable:$true] %s29_s19 }
  0x14   :  { %s62_s20 = scalar_lea.vmem %s30_s19, 128  ;;  %p67_p9 = scmp.lt.s32.totalorder %s30_s19, %s30_s19 }
  0x15   :  { %p63_p8 = scmp.ne.s32.totalorder %s30_s19, %s62_s20  ;;  %p68_p10 = scmp.lt.s32.totalorder %s62_s20, %s62_s20 }
  0x17   :  { %p69_p11 = por %p68_p10, %p67_p9 }
  0x19   :  { %p70_p12 = pnand %p69_p11, %p63_p8 }
  0x1b   :  { %73 = shalt.err (!%p70_p12)
}
  0x1c   :  { %s74_s23 = scalar_lea.hbm %s125_s1, 128 }
  0x1d   :  { %p75_p13 = scmp.ne.s32.totalorder %s125_s1, %s74_s23  ;;  %p78_p0 = scmp.lt.u32.totalorder %s74_s23, %s125_s1 }
  0x1f   :  { %p80_p1 = pnand %p78_p0, %p75_p13 }
  0x21   :  { %83 = shalt.err (!%p80_p1)
}
  0x22   :  { %32 = dma.vmem_to_hbm [thread:$0]  %s30_s19, 128, %s125_s1, [#allocation4]  }
  0x23   :  { %86 = dma.done.wait [#allocation4], 128  }
  0x24   :  { %87 = vsyncadd [#allocation4], 4294967168 }
  0x25   :  { %36 = vsyncpa [#allocation3], 1 }
  0x26   :  { %37 = vsyncpa [#allocation4], 1 }

// kernel: tpu_custom_call.1
= control target key start
LH: loop header
LB: loop body
LE: loop exit
PB: predicated region body
PF: predicated region fallthrough
CT: control target
= control target key end

     0   :  { %12 = vsyncpa [#allocation4], 0  ;;  %s2936_s0 = inlined_call_operand.vmem [shape: f32[2,256,32], index: 0, kind: input, shape index: {}]   ;;  %s2937_s1 = inlined_call_operand.vmem [shape: bf16[2,32,128], index: 1, kind: input, shape index: {}]   ;;  %s2938_s2 = inlined_call_operand.vmem [shape: f32[2,1,128], index: 2, kind: input, shape index: {}]   ;;  %s2939_s3 = inlined_call_operand.vmem [shape: bf16[2,2,128,128], index: 3, kind: input, shape index: {}]   ;;  %s2940_s4 = inlined_call_operand.vmem [shape: f32[2,2,1,128], index: 4, kind: input, shape index: {}]   ;;  %s2941_s5 = inlined_call_operand.vmem [shape: bf16[2,128,128], index: 5, kind: input, shape index: {}]   ;;  %s2942_s6 = inlined_call_operand.vmem [shape: f32[2,1,128], index: 6, kind: input, shape index: {}]   ;;  %s2943_s7 = inlined_call_operand.hbm [shape: f32[2,256,128], index: 7, kind: output, shape index: {}]  }
   0x1   :  { %14 = vsyncpa [#allocation4 + $0x1], 0  ;;  %s2519_s24 = smov 0   ;;  %s2521_s25 = smov 0  }
   0x2   :  { %s2523_s26 = smov 0   ;;  %s2525_s27 = smov 0  }
   0x3   :  { %s2527_s28 = smov 0   ;;  %s2529_s29 = smov 0  }
   0x4 LB: > { %s1875_s30 = sadd.s32 4294967295, %s2474_s29   ;;  %s1876_s8 = sadd.s32 4294967294, %s2474_s29   ;;  %s2474_s29 = sphi %s2529_s29, %s20_s29   ;;  %s2470_s28 = sphi %s2527_s28, %s2950_s28   ;;  %s2466_s27 = sphi %s2525_s27, %s2949_s27   ;;  %s2462_s26 = sphi %s2523_s26, %s2948_s26   ;;  %s2458_s25 = sphi %s2521_s25, %s2947_s25   ;;  %s2454_s24 = sphi %s2519_s24, %s2946_s24  }
   0x5   : > { %s39_s9 = sadd.s32 1, %s2470_s28  ;;  %s238_s10 = sadd.s32 1, %s2462_s26 }
   0x6   : > { %p41_p0 = scmp.ge.s32.totalorder %s39_s9, 2  ;;  %p248_p1 = scmp.ne.s32.totalorder %s2462_s26, %s2458_s25 }
   0x7   : > { %p249_p2 = scmp.eq.s32.totalorder %s1875_s30, 1  ;;  %p254_p3 = scmp.ne.s32.totalorder %s2458_s25, %s2454_s24 }
   0x8   : > { %s2952_s9 = smov (%p41_p0, %s39_s9), 0  ;;  %p255_p5 = scmp.eq.s32.totalorder %s1876_s8, 1 }
   0x9   : > { %p2559_p4 = por %p249_p2, %p248_p1  ;;  %s231_s12 = ssub.s32 %s2470_s28, %s2952_s9 }
   0xa   : > { %p1879_p6 = scmp.ge.s32.totalorder %s2474_s29, 1  ;;  %p236_p7 = scmp.eq.s32.totalorder %s231_s12, 0 }
   0xb   : > { %p2566_p8 = por %p255_p5, %p254_p3  ;;  %p335_p9 = scmp.lt.s32.totalorder %s2474_s29, 3 }
   0xc   : > { %s2572_s14 = scalar_select %p236_p7, %s2462_s26, %s238_s10  }
   0xd   : > { %p336_p10 = pnand %p1879_p6, %p335_p9 }
   0xe   : > { %p403_p11 = scmp.lt.s32.totalorder (!%p336_p10), %s2466_s27, 1  ;;  %vm520_vm0 = vcmask (!%p336_p10), 261120   ;;  %s399_s18 = sand.u32 (!%p336_p10), 1, %s2458_s25  }
   0xf   : > { %339 = sbr.rel (%p336_p10) target bundleno = 1000 (0x3e8), region = 48 }
  0x16   : > { %s2576_s15 = scalar_select %p403_p11, %s2466_s27, 1 }
  0x18   : > { %s1958_s16 = sshll.u32 %s2576_s15, 8  ;;  %s1959_s17 = sshll.u32 %s2576_s15, 4 }
  0x19   : > { %s2583_s20 = scalar_lea.vmem %s2936_s0, %s1958_s16  ;;  %s416_s23 = scalar_lea.vmem %s2937_s1, %s1959_s17 }
  0x1a   : > { %v2306_v0 = vld [vmem:[%s416_s23] sm:$0xff]   ;;  %v2307_v1 = vld [vmem:[%s416_s23 + $0x8] sm:$0xff]   ;;  %v451_v5 = vld [vmem:[%s2583_s20 + $0x10] sm:$0xff]  ;;  %s1960_s30 = sshll.u32 %s2576_s15, 7  ;;  %s1961_s16 = sshll.u32 %s2576_s15, 6 }
  0x1b   : > { %2053 = vmatprep.subr.bf16.mxu0 %v2306_v0  ;;  %v449_v2 = vld [vmem:[%s2583_s20] sm:$0xff]  ;;  %v450_v3 = vld [vmem:[%s2583_s20 + $0x8] sm:$0xff]  ;;  %v452_v6 = vld [vmem:[%s2583_s20 + $0x18] sm:$0xff]  ;;  %s2600_s12 = scalar_lea.vmem %s2939_s3, %s1960_s30  ;;  %s2622_s19 = scalar_lea.vmem %s2941_s5, %s1961_s16 }
  0x1c   : > { %2054 = vmatpush3.bf16.msra.mxu0 %v2306_v0  ;;  %v481_v4 = vpack.c.bf16 %v450_v3, %v449_v2  ;;  %v453_v7 = vld [vmem:[%s2583_s20 + $0x20] sm:$0xff]  ;;  %v454_v8 = vld [vmem:[%s2583_s20 + $0x28] sm:$0xff]  ;;  %v482_v9 = vpack.c.bf16 %v452_v6, %v451_v5  ;;  %v455_v11 = vld [vmem:[%s2583_s20 + $0x30] sm:$0xff]  ;;  %s419_s22 = scalar_lea.vmem %s2938_s2, %s2576_s15  ;;  %s1887_s23 = sshll.u32 %s2576_s15, 1 }
  0x1d   : > { %2055 = vmatprep.subr.bf16.mxu0 %v2307_v1  ;;  %v483_v10 = vpack.c.bf16 %v454_v8, %v453_v7  ;;  %v456_v12 = vld [vmem:[%s2583_s20 + $0x38] sm:$0xff]  ;;  %v457_v13 = vld [vmem:[%s2583_s20 + $0x40] sm:$0xff]  ;;  %v458_v14 = vld [vmem:[%s2583_s20 + $0x48] sm:$0xff]  ;;  %s2724_s10 = scalar_lea.vmem %s2940_s4, %s1887_s23  ;;  %s442_s17 = scalar_lea.vmem %s2942_s6, %s2576_s15 }
  0x1e   : > { %2057 = vmatprep.mubr.msk.bf16.mxu0 %vm520_vm0, %v481_v4  ;;  %v484_v15 = vpack.c.bf16 %v456_v12, %v455_v11  ;;  %v2308_v16 = vld [vmem:[%s2600_s12] sm:$0xff]   ;;  %v485_v17 = vpack.c.bf16 %v458_v14, %v457_v13  ;;  %v2309_v18 = vld [vmem:[%s2600_s12 + $0x8] sm:$0xff]   ;;  %v459_v19 = vld [vmem:[%s2583_s20 + $0x50] sm:$0xff]  ;;  %s1880_s15 = sshll.u32 %s399_s18, 8 }
  0x1f   : > { %2089 = vmatprep.subr.bf16.mxu1 %v2308_v16  ;;  %v460_v20 = vld [vmem:[%s2583_s20 + $0x58] sm:$0xff]  ;;  %v461_v21 = vld [vmem:[%s2583_s20 + $0x60] sm:$0xff]  ;;  %v2310_v22 = vld [vmem:[%s2600_s12 + $0x10] sm:$0xff]  }
  0x20   : > { %2056 = vmatpush3.bf16.msra.mxu0 %v2307_v1  ;;  %2090 = vmatpush3.bf16.msra.mxu1 %v2308_v16  ;;  %v462_v23 = vld [vmem:[%s2583_s20 + $0x68] sm:$0xff]  ;;  %v2311_v24 = vld [vmem:[%s2600_s12 + $0x18] sm:$0xff]   ;;  %v486_v25 = vpack.c.bf16 %v460_v20, %v459_v19  ;;  %v2312_v27 = vld [vmem:[%s2600_s12 + $0x20] sm:$0xff]  }
  0x21   : > { %2091 = vmatprep.subr.bf16.mxu1 %v2309_v18  ;;  %v487_v26 = vpack.c.bf16 %v462_v23, %v461_v21  ;;  %v463_v28 = vld [vmem:[%s2583_s20 + $0x70] sm:$0xff]  ;;  %v464_v29 = vld [vmem:[%s2583_s20 + $0x78] sm:$0xff]  ;;  %v465_v30 = vld [vmem:[%s2583_s20 + $0x80] sm:$0xff] }
  0x22   : > { %v466_v31 = vld [vmem:[%s2583_s20 + $0x88] sm:$0xff]  ;;  %v488_v33 = vpack.c.bf16 %v464_v29, %v463_v28  ;;  %v467_v35 = vld [vmem:[%s2583_s20 + $0x90] sm:$0xff]  ;;  %v468_v36 = vld [vmem:[%s2583_s20 + $0x98] sm:$0xff] }
  0x23   : > { %2058 = vmatmul.mubr.msk.bf16.vlgmr.msra.gmra.mrb[0].mxu0 %vm520_vm0, %v482_v9  ;;  %v2313_v32 = vld [vmem:[%s2600_s12 + $0x28] sm:$0xff]   ;;  %v489_v34 = vpack.c.bf16 %v466_v31, %v465_v30  ;;  %v469_v37 = vld [vmem:[%s2583_s20 + $0xa0] sm:$0xff]  ;;  %v490_v39 = vpack.c.bf16 %v468_v36, %v467_v35  ;;  %v471_v41 = vld [vmem:[%s2583_s20 + $0xb0] sm:$0xff] }
  0x24   : > { %2061 = vmatprep.mubr.msk.bf16.mxu0 %vm520_vm0, %v483_v10  ;;  %2092 = vmatpush3.bf16.msra.mxu1 %v2309_v18  ;;  %v470_v38 = vld [vmem:[%s2583_s20 + $0xa8] sm:$0xff]  ;;  %v472_v42 = vld [vmem:[%s2583_s20 + $0xb8] sm:$0xff]  ;;  %v473_v43 = vld [vmem:[%s2583_s20 + $0xc0] sm:$0xff] }
  0x25   : > { %2093 = vmatprep.subr.bf16.mxu1 %v2310_v22  ;;  %v491_v40 = vpack.c.bf16 %v470_v38, %v469_v37  ;;  %v474_v44 = vld [vmem:[%s2583_s20 + $0xc8] sm:$0xff]  ;;  %v492_v45 = vpack.c.bf16 %v472_v42, %v471_v41  ;;  %v475_v47 = vld [vmem:[%s2583_s20 + $0xd0] sm:$0xff]  ;;  %v476_v48 = vld [vmem:[%s2583_s20 + $0xd8] sm:$0xff] }
  0x26   : > { %v493_v46 = vpack.c.bf16 %v474_v44, %v473_v43  ;;  %v477_v49 = vld [vmem:[%s2583_s20 + $0xe0] sm:$0xff]  ;;  %v478_v50 = vld [vmem:[%s2583_s20 + $0xe8] sm:$0xff]  ;;  %v494_v51 = vpack.c.bf16 %v476_v48, %v475_v47  ;;  %v479_v53 = vld [vmem:[%s2583_s20 + $0xf0] sm:$0xff] }
  0x27   : > { %v495_v52 = vpack.c.bf16 %v478_v50, %v477_v49  ;;  %v480_v54 = vld [vmem:[%s2583_s20 + $0xf8] sm:$0xff]  ;;  %v2314_v56 = vld [vmem:[%s2600_s12 + $0x30] sm:$0xff]   ;;  %v2316_v58 = vld [vmem:[%s2600_s12 + $0x40] sm:$0xff]   ;;  %s1962_s20 = sshll.u32 %s2466_s27, 12  ;;  %s2890_s27 = scalar_lea.sflag [#allocation4], %s399_s18 }
  0x28   : > { %2094 = vmatpush3.bf16.msra.mxu1 %v2310_v22  ;;  %v496_v55 = vpack.c.bf16 %v480_v54, %v479_v53  ;;  %v2315_v57 = vld [vmem:[%s2600_s12 + $0x38] sm:$0xff]   ;;  %v2317_v59 = vld [vmem:[%s2600_s12 + $0x48] sm:$0xff]   ;;  %2137 = vmatprep.subr.bf16.mxu0 %v2316_v58  ;;  %v2318_v60 = vld [vmem:[%s2600_s12 + $0x50] sm:$0xff]   ;;  %s2881_s30 = scalar_lea.hbm %s2943_s7, %s1962_s20 }
  0x29   : > { %2095 = vmatprep.subr.bf16.mxu1 %v2311_v24  ;;  %2138 = vmatpush3.bf16.msra.mxu0 %v2316_v58  ;;  %v2319_v61 = vld [vmem:[%s2600_s12 + $0x58] sm:$0xff]   ;;  %v2320_v62 = vld [vmem:[%s2600_s12 + $0x60] sm:$0xff]   ;;  %v2321_v63 = vld [vmem:[%s2600_s12 + $0x68] sm:$0xff]  }
  0x2a   : > { %2139 = vmatprep.subr.bf16.mxu0 %v2317_v59  ;;  %v2322_v0 = vld [vmem:[%s2600_s12 + $0x70] sm:$0xff]   ;;  %v2667_v1 = vld [vmem:[%s419_s22] ss:$0 sm:$0xff] }
  0x2b   : > { %2062 = vmatmul.mubr.msk.bf16.gmra.mrb[4].mxu0 %vm520_vm0, %v484_v15 }
  0x2c   : > { %2065 = vmatprep.mubr.msk.bf16.mxu0 %vm520_vm0, %v485_v17  ;;  %2096 = vmatpush3.bf16.msra.mxu1 %v2311_v24 }
  0x2d   : > { %2097 = vmatprep.subr.bf16.mxu1 %v2312_v27  ;;  %2140 = vmatpush3.bf16.msra.mxu0 %v2317_v59 }
  0x2e   : > { %2141 = vmatprep.subr.bf16.mxu0 %v2318_v60 }
  0x30   : > { %2098 = vmatpush3.bf16.msra.mxu1 %v2312_v27 }
  0x31   : > { %2099 = vmatprep.subr.bf16.mxu1 %v2313_v32  ;;  %2142 = vmatpush3.bf16.msra.mxu0 %v2318_v60 }
  0x32   : > { %2143 = vmatprep.subr.bf16.mxu0 %v2319_v61 }
  0x33   : > { %2066 = vmatmul.mubr.msk.bf16.gmra.mrb[8].mxu0 %vm520_vm0, %v486_v25 }
  0x34   : > { %2069 = vmatprep.mubr.msk.bf16.mxu0 %vm520_vm0, %v487_v26  ;;  %2100 = vmatpush3.bf16.msra.mxu1 %v2313_v32 }
  0x35   : > { %2101 = vmatprep.subr.bf16.mxu1 %v2314_v56  ;;  %2144 = vmatpush3.bf16.msra.mxu0 %v2319_v61 }
  0x36   : > { %2145 = vmatprep.subr.bf16.mxu0 %v2320_v62 }
  0x38   : > { %2102 = vmatpush3.bf16.msra.mxu1 %v2314_v56 }
  0x39   : > { %2103 = vmatprep.subr.bf16.mxu1 %v2315_v57  ;;  %2146 = vmatpush3.bf16.msra.mxu0 %v2320_v62 }
  0x3a   : > { %2147 = vmatprep.subr.bf16.mxu0 %v2321_v63 }
  0x3b   : > { %2070 = vmatmul.mubr.msk.bf16.gmra.mrb[12].mxu0 %vm520_vm0, %v488_v33 }
  0x3c   : > { %2073 = vmatprep.mubr.msk.bf16.mxu0 %vm520_vm0, %v489_v34  ;;  %2104 = vmatpush3.bf16.msra.mxu1 %v2315_v57 }
  0x3d   : > { %2148 = vmatpush3.bf16.msra.mxu0 %v2321_v63 }
  0x3e   : > { %2149 = vmatprep.subr.bf16.mxu0 %v2322_v0 }
  0x41   : > { %2150 = vmatpush3.bf16.msra.mxu0 %v2322_v0 }
  0x43   : > { %2074 = vmatmul.mubr.msk.bf16.gmra.mrb[16].mxu0 %vm520_vm0, %v490_v39 }
  0x44   : > { %2077 = vmatprep.mubr.msk.bf16.mxu0 %vm520_vm0, %v491_v40 }
  0x4b   : > { %2078 = vmatmul.mubr.msk.bf16.gmra.mrb[20].mxu0 %vm520_vm0, %v492_v45 }
  0x4c   : > { %2081 = vmatprep.mubr.msk.bf16.mxu0 %vm520_vm0, %v493_v46 }
  0x53   : > { %2082 = vmatmul.mubr.msk.bf16.gmra.mrb[24].mxu0 %vm520_vm0, %v494_v51 }
  0x54   : > { %2085 = vmatprep.mubr.msk.bf16.mxu0 %vm520_vm0, %v495_v52 }
  0x5b   : > { %2086 = vmatmul.mubr.msk.bf16.gmra.mrb[28].mxu0 %vm520_vm0, %v496_v55 }
  0xf6   : > { %v2059_v2 = vpop.f32.mrb[0].mxu0 }
  0xf7   : > { %v612_v3 = vadd.f32 %v2059_v2, %v2667_v1  ;;  %v603_v4 = vpop.f32.mrb[1].mxu0 }
  0xf8   : > { %v604_v5 = vadd.f32 %v2667_v1, %v603_v4  ;;  %v2060_v6 = vpop.f32.mrb[2].mxu0 }
  0xf9   : > { %v615_v7 = vadd.f32 %v2060_v6, %v2667_v1  ;;  %v606_v8 = vpop.f32.mrb[3].mxu0  ;;  %v732_v10 = vmax.f32 %v612_v3, 0.0 }
  0xfa   : > { %v607_v9 = vadd.f32 %v2667_v1, %v606_v8  ;;  %v730_v12 = vmax.f32 %v604_v5, 0.0 }
  0xfb   : > { %v733_v11 = vmax.f32 %v615_v7, 0.0 }
  0xfc   : > { %v731_v13 = vmax.f32 %v607_v9, 0.0 }
  0xfd   : > { %v763_v14 = vpack.c.bf16 %v733_v11, %v732_v10 }
  0xfe   : > { %v2063_v15 = vpop.f32.mrb[4].mxu0  ;;  %v762_v16 = vpack.c.bf16 %v731_v13, %v730_v12 }
  0xff   : > { %v628_v17 = vadd.f32 %v2063_v15, %v2667_v1  ;;  %v619_v18 = vpop.f32.mrb[5].mxu0 }
 0x100   : > { %v620_v19 = vadd.f32 %v2667_v1, %v619_v18  ;;  %v2064_v20 = vpop.f32.mrb[6].mxu0  ;;  %2105 = vmatprep.mubr.bf16.mxu1 %v762_v16 }
 0x101   : > { %v631_v21 = vadd.f32 %v2064_v20, %v2667_v1  ;;  %v622_v22 = vpop.f32.mrb[7].mxu0  ;;  %2106 = vmatmul.mubr.bf16.vlgmr.msra.gmra.mrb[0].mxu1 %v763_v14  ;;  %v736_v24 = vmax.f32 %v628_v17, 0.0 }
 0x102   : > { %v623_v23 = vadd.f32 %v2667_v1, %v622_v22  ;;  %v734_v26 = vmax.f32 %v620_v19, 0.0 }
 0x103   : > { %v737_v25 = vmax.f32 %v631_v21, 0.0 }
 0x104   : > { %v735_v27 = vmax.f32 %v623_v23, 0.0 }
 0x105   : > { %v765_v28 = vpack.c.bf16 %v737_v25, %v736_v24 }
 0x106   : > { %v764_v29 = vpack.c.bf16 %v735_v27, %v734_v26  ;;  %v2067_v30 = vpop.f32.mrb[8].mxu0 }
 0x107   : > { %v644_v31 = vadd.f32 %v2067_v30, %v2667_v1  ;;  %v635_v32 = vpop.f32.mrb[9].mxu0 }
 0x108   : > { %v636_v33 = vadd.f32 %v2667_v1, %v635_v32  ;;  %v2068_v34 = vpop.f32.mrb[10].mxu0  ;;  %2109 = vmatprep.mubr.bf16.mxu1 %v764_v29 }
 0x109   : > { %v647_v35 = vadd.f32 %v2068_v34, %v2667_v1  ;;  %v638_v36 = vpop.f32.mrb[11].mxu0  ;;  %2110 = vmatmul.mubr.bf16.gmra.mrb[4].mxu1 %v765_v28  ;;  %v740_v38 = vmax.f32 %v644_v31, 0.0 }
 0x10a   : > { %v639_v37 = vadd.f32 %v2667_v1, %v638_v36  ;;  %v738_v40 = vmax.f32 %v636_v33, 0.0 }
 0x10b   : > { %v741_v39 = vmax.f32 %v647_v35, 0.0 }
 0x10c   : > { %v739_v41 = vmax.f32 %v639_v37, 0.0 }
 0x10d   : > { %v767_v42 = vpack.c.bf16 %v741_v39, %v740_v38 }
 0x10e   : > { %v766_v43 = vpack.c.bf16 %v739_v41, %v738_v40  ;;  %v2071_v44 = vpop.f32.mrb[12].mxu0 }
 0x10f   : > { %v660_v45 = vadd.f32 %v2071_v44, %v2667_v1  ;;  %v651_v46 = vpop.f32.mrb[13].mxu0 }
 0x110   : > { %v652_v47 = vadd.f32 %v2667_v1, %v651_v46  ;;  %v2072_v48 = vpop.f32.mrb[14].mxu0  ;;  %2113 = vmatprep.mubr.bf16.mxu1 %v766_v43 }
 0x111   : > { %v663_v49 = vadd.f32 %v2072_v48, %v2667_v1  ;;  %v654_v50 = vpop.f32.mrb[15].mxu0  ;;  %2114 = vmatmul.mubr.bf16.gmra.mrb[8].mxu1 %v767_v42  ;;  %v744_v52 = vmax.f32 %v660_v45, 0.0 }
 0x112   : > { %v655_v51 = vadd.f32 %v2667_v1, %v654_v50  ;;  %v742_v54 = vmax.f32 %v652_v47, 0.0 }
 0x113   : > { %v745_v53 = vmax.f32 %v663_v49, 0.0 }
 0x114   : > { %v743_v55 = vmax.f32 %v655_v51, 0.0  ;;  %v2323_v51 = vld [vmem:[%s2600_s12 + $0x78] sm:$0xff]  }
 0x115   : > { %v769_v56 = vpack.c.bf16 %v745_v53, %v744_v52  ;;  %2151 = vmatprep.subr.bf16.mxu0 %v2323_v51  ;;  %v2324_v52 = vld [vmem:[%s2622_s19] sm:$0xff]   ;;  %v2325_v53 = vld [vmem:[%s2622_s19 + $0x8] sm:$0xff]  }
 0x116   : > { %v768_v57 = vpack.c.bf16 %v743_v55, %v742_v54  ;;  %v2075_v58 = vpop.f32.mrb[16].mxu0  ;;  %2152 = vmatpush3.bf16.msra.mxu0 %v2323_v51  ;;  %2233 = vmatprep.subr.bf16.mxu1 %v2324_v52  ;;  %v2706_v54 = vld [vmem:[%s2622_s19 + $0x18] sm:$0xff]   ;;  %v2710_v55 = vld [vmem:[%s2622_s19 + $0x20] sm:$0xff]  }
 0x117   : > { %v676_v59 = vadd.f32 %v2075_v58, %v2667_v1  ;;  %v667_v60 = vpop.f32.mrb[17].mxu0  ;;  %2185 = vmatprep.subr.bf16.mxu0 %v2324_v52  ;;  %2241 = vmatpush3.bf16.msra.mxu1 %v2324_v52 }
 0x118   : > { %v668_v61 = vadd.f32 %v2667_v1, %v667_v60  ;;  %v2076_v62 = vpop.f32.mrb[18].mxu0  ;;  %2117 = vmatprep.mubr.bf16.mxu1 %v768_v57  ;;  %2234 = vmatprep.subr.bf16.mxu1 %v2325_v53  ;;  %v2727_v57 = vld [vmem:[%s2724_s10] ss:$0 sm:$0xff] }
 0x119   : > { %v679_v63 = vadd.f32 %v2076_v62, %v2667_v1  ;;  %v670_v0 = vpop.f32.mrb[19].mxu0  ;;  %2118 = vmatmul.mubr.bf16.gmra.mrb[12].mxu1 %v769_v56  ;;  %v748_v3 = vmax.f32 %v676_v59, 0.0  ;;  %v2715_v56 = vld [vmem:[%s2622_s19 + $0x28] sm:$0xff]  }
 0x11a   : > { %v671_v2 = vadd.f32 %v2667_v1, %v670_v0  ;;  %v746_v5 = vmax.f32 %v668_v61, 0.0 }
 0x11b   : > { %v749_v4 = vmax.f32 %v679_v63, 0.0  ;;  %2242 = vmatpush3.bf16.msra.mxu1 %v2325_v53 }
 0x11c   : > { %v747_v6 = vmax.f32 %v671_v2, 0.0 }
 0x11d   : > { %v771_v7 = vpack.c.bf16 %v749_v4, %v748_v3 }
 0x11e   : > { %v770_v8 = vpack.c.bf16 %v747_v6, %v746_v5  ;;  %v2079_v9 = vpop.f32.mrb[20].mxu0 }
 0x11f   : > { %v692_v10 = vadd.f32 %v2079_v9, %v2667_v1  ;;  %v683_v11 = vpop.f32.mrb[21].mxu0 }
 0x120   : > { %v684_v12 = vadd.f32 %v2667_v1, %v683_v11  ;;  %v2080_v13 = vpop.f32.mrb[22].mxu0  ;;  %2121 = vmatprep.mubr.bf16.mxu1 %v770_v8 }
 0x121   : > { %v695_v14 = vadd.f32 %v2080_v13, %v2667_v1  ;;  %v686_v15 = vpop.f32.mrb[23].mxu0  ;;  %2122 = vmatmul.mubr.bf16.gmra.mrb[16].mxu1 %v771_v7  ;;  %v752_v17 = vmax.f32 %v692_v10, 0.0 }
 0x122   : > { %v687_v16 = vadd.f32 %v2667_v1, %v686_v15  ;;  %v750_v19 = vmax.f32 %v684_v12, 0.0 }
 0x123   : > { %v753_v18 = vmax.f32 %v695_v14, 0.0 }
 0x124   : > { %v751_v20 = vmax.f32 %v687_v16, 0.0 }
 0x125   : > { %v773_v21 = vpack.c.bf16 %v753_v18, %v752_v17 }
 0x126   : > { %v772_v22 = vpack.c.bf16 %v751_v20, %v750_v19  ;;  %v2083_v23 = vpop.f32.mrb[24].mxu0 }
 0x127   : > { %v708_v24 = vadd.f32 %v2083_v23, %v2667_v1  ;;  %v699_v25 = vpop.f32.mrb[25].mxu0 }
 0x128   : > { %v700_v26 = vadd.f32 %v2667_v1, %v699_v25  ;;  %v2084_v27 = vpop.f32.mrb[26].mxu0  ;;  %2125 = vmatprep.mubr.bf16.mxu1 %v772_v22 }
 0x129   : > { %v711_v28 = vadd.f32 %v2084_v27, %v2667_v1  ;;  %v702_v29 = vpop.f32.mrb[27].mxu0  ;;  %2126 = vmatmul.mubr.bf16.gmra.mrb[20].mxu1 %v773_v21  ;;  %v756_v31 = vmax.f32 %v708_v24, 0.0 }
 0x12a   : > { %v703_v30 = vadd.f32 %v2667_v1, %v702_v29  ;;  %v754_v33 = vmax.f32 %v700_v26, 0.0 }
 0x12b   : > { %v757_v32 = vmax.f32 %v711_v28, 0.0 }
 0x12c   : > { %v755_v34 = vmax.f32 %v703_v30, 0.0 }
 0x12d   : > { %v775_v35 = vpack.c.bf16 %v757_v32, %v756_v31 }
 0x12e   : > { %v774_v36 = vpack.c.bf16 %v755_v34, %v754_v33  ;;  %v2087_v37 = vpop.f32.mrb[28].mxu0 }
 0x12f   : > { %v724_v38 = vadd.f32 %v2087_v37, %v2667_v1  ;;  %v715_v39 = vpop.f32.mrb[29].mxu0 }
 0x130   : > { %v716_v40 = vadd.f32 %v2667_v1, %v715_v39  ;;  %v2088_v41 = vpop.f32.mrb[30].mxu0  ;;  %2129 = vmatprep.mubr.bf16.mxu1 %v774_v36 }
 0x131   : > { %v727_v42 = vadd.f32 %v2088_v41, %v2667_v1  ;;  %v718_v43 = vpop.f32.mrb[31].mxu0  ;;  %2130 = vmatmul.mubr.bf16.gmra.mrb[24].mxu1 %v775_v35  ;;  %v760_v45 = vmax.f32 %v724_v38, 0.0 }
 0x132   : > { %v719_v44 = vadd.f32 %v2667_v1, %v718_v43  ;;  %v758_v47 = vmax.f32 %v716_v40, 0.0  ;;  %v2326_v1 = vld [vmem:[%s2622_s19 + $0x10] sm:$0xff]  }
 0x133   : > { %v761_v46 = vmax.f32 %v727_v42, 0.0  ;;  %2235 = vmatprep.subr.bf16.mxu1 %v2326_v1 }
 0x134   : > { %v759_v48 = vmax.f32 %v719_v44, 0.0  ;;  %2243 = vmatpush3.bf16.msra.mxu1 %v2326_v1 }
 0x135   : > { %v777_v49 = vpack.c.bf16 %v761_v46, %v760_v45  ;;  %2236 = vmatprep.subr.bf16.mxu1 %v2706_v54 }
 0x136   : > { %v776_v50 = vpack.c.bf16 %v759_v48, %v758_v47 }
 0x138   : > { %2133 = vmatprep.mubr.bf16.mxu1 %v776_v50  ;;  %2244 = vmatpush3.bf16.msra.mxu1 %v2706_v54 }
 0x139   : > { %2134 = vmatmul.mubr.bf16.gmra.mrb[28].mxu1 %v777_v49  ;;  %2237 = vmatprep.subr.bf16.mxu1 %v2710_v55 }
 0x13c   : > { %2245 = vmatpush3.bf16.msra.mxu1 %v2710_v55 }
 0x13d   : > { %2238 = vmatprep.subr.bf16.mxu1 %v2715_v56 }
 0x140   : > { %2246 = vmatpush3.bf16.msra.mxu1 %v2715_v56 }
 0x1d4   : > { %v2107_v58 = vpop.f32.mrb[0].mxu1 }
 0x1d5   : > { %v892_v59 = vadd.f32 %v2107_v58, %v2727_v57  ;;  %v883_v60 = vpop.f32.mrb[1].mxu1 }
 0x1d6   : > { %v884_v61 = vadd.f32 %v2727_v57, %v883_v60  ;;  %v2108_v62 = vpop.f32.mrb[2].mxu1 }
 0x1d7   : > { %v895_v63 = vadd.f32 %v2108_v62, %v2727_v57  ;;  %v886_v0 = vpop.f32.mrb[3].mxu1  ;;  %v1012_v3 = vmax.f32 %v892_v59, 0.0 }
 0x1d8   : > { %v887_v2 = vadd.f32 %v2727_v57, %v886_v0  ;;  %v1010_v5 = vmax.f32 %v884_v61, 0.0 }
 0x1d9   : > { %v1013_v4 = vmax.f32 %v895_v63, 0.0 }
 0x1da   : > { %v1011_v6 = vmax.f32 %v887_v2, 0.0 }
 0x1db   : > { %v1043_v7 = vpack.c.bf16 %v1013_v4, %v1012_v3 }
 0x1dc   : > { %v1042_v8 = vpack.c.bf16 %v1011_v6, %v1010_v5  ;;  %v2111_v9 = vpop.f32.mrb[4].mxu1 }
 0x1dd   : > { %v908_v10 = vadd.f32 %v2111_v9, %v2727_v57  ;;  %v899_v11 = vpop.f32.mrb[5].mxu1 }
 0x1de   : > { %v900_v12 = vadd.f32 %v2727_v57, %v899_v11  ;;  %v2112_v13 = vpop.f32.mrb[6].mxu1  ;;  %2153 = vmatprep.mubr.bf16.mxu0 %v1042_v8 }
 0x1df   : > { %v911_v14 = vadd.f32 %v2112_v13, %v2727_v57  ;;  %v902_v15 = vpop.f32.mrb[7].mxu1  ;;  %2154 = vmatmul.mubr.bf16.vlgmr.msra.gmra.mrb[32].mxu0 %v1043_v7  ;;  %v1016_v17 = vmax.f32 %v908_v10, 0.0 }
 0x1e0   : > { %v903_v16 = vadd.f32 %v2727_v57, %v902_v15  ;;  %2186 = vmatpush3.bf16.msra.mxu0 %v2324_v52  ;;  %v1014_v19 = vmax.f32 %v900_v12, 0.0 }
 0x1e1   : > { %v1017_v18 = vmax.f32 %v911_v14, 0.0  ;;  %2187 = vmatprep.subr.bf16.mxu0 %v2325_v53 }
 0x1e2   : > { %v1015_v20 = vmax.f32 %v903_v16, 0.0 }
 0x1e3   : > { %v1045_v21 = vpack.c.bf16 %v1017_v18, %v1016_v17 }
 0x1e4   : > { %v1044_v22 = vpack.c.bf16 %v1015_v20, %v1014_v19  ;;  %v2115_v23 = vpop.f32.mrb[8].mxu1  ;;  %2188 = vmatpush3.bf16.msra.mxu0 %v2325_v53 }
 0x1e5   : > { %v924_v24 = vadd.f32 %v2115_v23, %v2727_v57  ;;  %v915_v25 = vpop.f32.mrb[9].mxu1  ;;  %2189 = vmatprep.subr.bf16.mxu0 %v2326_v1 }
 0x1e6   : > { %v916_v26 = vadd.f32 %v2727_v57, %v915_v25  ;;  %v2116_v27 = vpop.f32.mrb[10].mxu1  ;;  %2157 = vmatprep.mubr.bf16.mxu0 %v1044_v22 }
 0x1e7   : > { %v927_v28 = vadd.f32 %v2116_v27, %v2727_v57  ;;  %v918_v29 = vpop.f32.mrb[11].mxu1  ;;  %2158 = vmatmul.mubr.bf16.gmra.mrb[36].mxu0 %v1045_v21  ;;  %v1020_v31 = vmax.f32 %v924_v24, 0.0 }
 0x1e8   : > { %v919_v30 = vadd.f32 %v2727_v57, %v918_v29  ;;  %2190 = vmatpush3.bf16.msra.mxu0 %v2326_v1  ;;  %v1018_v33 = vmax.f32 %v916_v26, 0.0 }
 0x1e9   : > { %v1021_v32 = vmax.f32 %v927_v28, 0.0  ;;  %2191 = vmatprep.subr.bf16.mxu0 %v2706_v54 }
 0x1ea   : > { %v1019_v34 = vmax.f32 %v919_v30, 0.0 }
 0x1eb   : > { %v1047_v35 = vpack.c.bf16 %v1021_v32, %v1020_v31 }
 0x1ec   : > { %v1046_v36 = vpack.c.bf16 %v1019_v34, %v1018_v33  ;;  %v2119_v37 = vpop.f32.mrb[12].mxu1  ;;  %2192 = vmatpush3.bf16.msra.mxu0 %v2706_v54 }
 0x1ed   : > { %v940_v38 = vadd.f32 %v2119_v37, %v2727_v57  ;;  %v931_v39 = vpop.f32.mrb[13].mxu1  ;;  %2193 = vmatprep.subr.bf16.mxu0 %v2710_v55 }
 0x1ee   : > { %v932_v40 = vadd.f32 %v2727_v57, %v931_v39  ;;  %v2120_v41 = vpop.f32.mrb[14].mxu1  ;;  %2161 = vmatprep.mubr.bf16.mxu0 %v1046_v36 }
 0x1ef   : > { %v943_v42 = vadd.f32 %v2120_v41, %v2727_v57  ;;  %v934_v43 = vpop.f32.mrb[15].mxu1  ;;  %2162 = vmatmul.mubr.bf16.gmra.mrb[40].mxu0 %v1047_v35  ;;  %v1024_v45 = vmax.f32 %v940_v38, 0.0 }
 0x1f0   : > { %v935_v44 = vadd.f32 %v2727_v57, %v934_v43  ;;  %2194 = vmatpush3.bf16.msra.mxu0 %v2710_v55  ;;  %v1022_v47 = vmax.f32 %v932_v40, 0.0 }
 0x1f1   : > { %v1025_v46 = vmax.f32 %v943_v42, 0.0  ;;  %2195 = vmatprep.subr.bf16.mxu0 %v2715_v56 }
 0x1f2   : > { %v1023_v48 = vmax.f32 %v935_v44, 0.0  ;;  %v2330_v44 = vld [vmem:[%s2622_s19 + $0x30] sm:$0xff]  }
 0x1f3   : > { %v1049_v49 = vpack.c.bf16 %v1025_v46, %v1024_v45  ;;  %2239 = vmatprep.subr.bf16.mxu1 %v2330_v44  ;;  %v2331_v45 = vld [vmem:[%s2622_s19 + $0x38] sm:$0xff]   ;;  %s2821_s19 = scalar_lea.vmem [#allocation3], %s1880_s15 }
 0x1f4   : > { %v1048_v50 = vpack.c.bf16 %v1023_v48, %v1022_v47  ;;  %v2123_v51 = vpop.f32.mrb[16].mxu1  ;;  %2196 = vmatpush3.bf16.msra.mxu0 %v2715_v56  ;;  %2247 = vmatpush3.bf16.msra.mxu1 %v2330_v44  ;;  %s1717_s21 = sshll.u32 %s2821_s19, 4  ;;  %s2883_s21 = int_to_ptr.vmem [resolvable:$true] %s1717_s21 }
 0x1f5   : > { %v956_v52 = vadd.f32 %v2123_v51, %v2727_v57  ;;  %v947_v53 = vpop.f32.mrb[17].mxu1  ;;  %2197 = vmatprep.subr.bf16.mxu0 %v2330_v44  ;;  %2240 = vmatprep.subr.bf16.mxu1 %v2331_v45  ;;  %s2396_s8 = scalar_lea.vmem %s2883_s21, 4096 }
 0x1f6   : > { %v948_v1 = vadd.f32 %v2727_v57, %v947_v53  ;;  %v2124_v54 = vpop.f32.mrb[18].mxu1  ;;  %2165 = vmatprep.mubr.bf16.mxu0 %v1048_v50  ;;  %p2397_p12 = scmp.ne.s32.totalorder %s2883_s21, %s2396_s8 }
 0x1f7   : > { %v959_v55 = vadd.f32 %v2124_v54, %v2727_v57  ;;  %v950_v58 = vpop.f32.mrb[19].mxu1  ;;  %2166 = vmatmul.mubr.bf16.gmra.mrb[44].mxu0 %v1049_v49  ;;  %v1028_v60 = vmax.f32 %v956_v52, 0.0 }
 0x1f8   : > { %v951_v59 = vadd.f32 %v2727_v57, %v950_v58  ;;  %v1026_v62 = vmax.f32 %v948_v1, 0.0  ;;  %2198 = vmatpush3.bf16.msra.mxu0 %v2330_v44  ;;  %2248 = vmatpush3.bf16.msra.mxu1 %v2331_v45  ;;  %p2398_p13 = pnand %p2397_p12, %p2559_p4 }
 0x1f9   : > { %v1029_v61 = vmax.f32 %v959_v55, 0.0  ;;  %2199 = vmatprep.subr.bf16.mxu0 %v2331_v45 }
 0x1fa   : > { %v1027_v63 = vmax.f32 %v951_v59, 0.0  ;;  %p2399_p0 = pneg %p2398_p13 }
 0x1fb   : > { %v1051_v0 = vpack.c.bf16 %v1029_v61, %v1028_v60 }
 0x1fc   : > { %v1050_v2 = vpack.c.bf16 %v1027_v63, %v1026_v62  ;;  %v2127_v56 = vpop.f32.mrb[20].mxu1  ;;  %2200 = vmatpush3.bf16.msra.mxu0 %v2331_v45 }
 0x1fd   : > { %v972_v3 = vadd.f32 %v2127_v56, %v2727_v57  ;;  %v963_v4 = vpop.f32.mrb[21].mxu1 }
 0x1fe   : > { %v964_v5 = vadd.f32 %v2727_v57, %v963_v4  ;;  %v2128_v6 = vpop.f32.mrb[22].mxu1  ;;  %2169 = vmatprep.mubr.bf16.mxu0 %v1050_v2 }
 0x1ff   : > { %v975_v7 = vadd.f32 %v2128_v6, %v2727_v57  ;;  %v966_v8 = vpop.f32.mrb[23].mxu1  ;;  %2170 = vmatmul.mubr.bf16.gmra.mrb[48].mxu0 %v1051_v0  ;;  %v1032_v10 = vmax.f32 %v972_v3, 0.0 }
 0x200   : > { %v967_v9 = vadd.f32 %v2727_v57, %v966_v8  ;;  %v1030_v12 = vmax.f32 %v964_v5, 0.0 }
 0x201   : > { %v1033_v11 = vmax.f32 %v975_v7, 0.0 }
 0x202   : > { %v1031_v13 = vmax.f32 %v967_v9, 0.0 }
 0x203   : > { %v1053_v14 = vpack.c.bf16 %v1033_v11, %v1032_v10 }
 0x204   : > { %v1052_v15 = vpack.c.bf16 %v1031_v13, %v1030_v12  ;;  %v2131_v16 = vpop.f32.mrb[24].mxu1 }
 0x205   : > { %v988_v17 = vadd.f32 %v2131_v16, %v2727_v57  ;;  %v979_v18 = vpop.f32.mrb[25].mxu1 }
 0x206   : > { %v980_v19 = vadd.f32 %v2727_v57, %v979_v18  ;;  %v2132_v20 = vpop.f32.mrb[26].mxu1  ;;  %2173 = vmatprep.mubr.bf16.mxu0 %v1052_v15 }
 0x207   : > { %v991_v21 = vadd.f32 %v2132_v20, %v2727_v57  ;;  %v982_v22 = vpop.f32.mrb[27].mxu1  ;;  %2174 = vmatmul.mubr.bf16.gmra.mrb[52].mxu0 %v1053_v14  ;;  %v1036_v24 = vmax.f32 %v988_v17, 0.0 }
 0x208   : > { %v983_v23 = vadd.f32 %v2727_v57, %v982_v22  ;;  %v1034_v26 = vmax.f32 %v980_v19, 0.0 }
 0x209   : > { %v1037_v25 = vmax.f32 %v991_v21, 0.0 }
 0x20a   : > { %v1035_v27 = vmax.f32 %v983_v23, 0.0 }
 0x20b   : > { %v1055_v28 = vpack.c.bf16 %v1037_v25, %v1036_v24 }
 0x20c   : > { %v1054_v29 = vpack.c.bf16 %v1035_v27, %v1034_v26  ;;  %v2135_v30 = vpop.f32.mrb[28].mxu1 }
 0x20d   : > { %v1004_v31 = vadd.f32 %v2135_v30, %v2727_v57  ;;  %v995_v32 = vpop.f32.mrb[29].mxu1 }
 0x20e   : > { %v996_v33 = vadd.f32 %v2727_v57, %v995_v32  ;;  %v2136_v34 = vpop.f32.mrb[30].mxu1  ;;  %2177 = vmatprep.mubr.bf16.mxu0 %v1054_v29 }
 0x20f   : > { %v1007_v35 = vadd.f32 %v2136_v34, %v2727_v57  ;;  %v998_v36 = vpop.f32.mrb[31].mxu1  ;;  %2178 = vmatmul.mubr.bf16.gmra.mrb[56].mxu0 %v1055_v28  ;;  %v1040_v38 = vmax.f32 %v1004_v31, 0.0 }
 0x210   : > { %v999_v37 = vadd.f32 %v2727_v57, %v998_v36  ;;  %v1038_v40 = vmax.f32 %v996_v33, 0.0  ;;  %v2770_v57 = vld [vmem:[%s2724_s10 + $0x1] ss:$0 sm:$0xff]  ;;  %s2476_s10 = smov [#allocation3]  }
 0x211   : > { %v1041_v39 = vmax.f32 %v1007_v35, 0.0  ;;  %s2400_s12 = sshll.u32 %s2476_s10, 4  ;;  %s2401_s12 = int_to_ptr.vmem [resolvable:$false] %s2400_s12 }
 0x212   : > { %v1039_v41 = vmax.f32 %v999_v37, 0.0  ;;  %s2402_s16 = scalar_lea.vmem %s2401_s12, 8192  ;;  %p2403_p1 = scmp.lt.s32.totalorder %s2883_s21, %s2401_s12 }
 0x213   : > { %v1057_v42 = vpack.c.bf16 %v1041_v39, %v1040_v38  ;;  %p2404_p2 = scmp.lt.s32.totalorder %s2402_s16, %s2396_s8 }
 0x214   : > { %v1056_v43 = vpack.c.bf16 %v1039_v41, %v1038_v40 }
 0x215   : > { %p2405_p3 = por %p2404_p2, %p2403_p1 }
 0x216   : > { %2181 = vmatprep.mubr.bf16.mxu0 %v1056_v43 }
 0x217   : > { %2182 = vmatmul.mubr.bf16.gmra.mrb[60].mxu0 %v1057_v42  ;;  %p2406_p5 = pnand %p2405_p3, %p2399_p0 }
 0x2b2   : > { %v2155_v46 = vpop.f32.mrb[32].mxu0 }
 0x2b3   : > { %v1174_v47 = vadd.f32 %v2155_v46, %v2770_v57  ;;  %v1165_v48 = vpop.f32.mrb[33].mxu0 }
 0x2b4   : > { %v1166_v49 = vadd.f32 %v2770_v57, %v1165_v48  ;;  %v2156_v50 = vpop.f32.mrb[34].mxu0 }
 0x2b5   : > { %v1177_v51 = vadd.f32 %v2156_v50, %v2770_v57  ;;  %v1168_v52 = vpop.f32.mrb[35].mxu0  ;;  %v1294_v1 = vmax.f32 %v1174_v47, 0.0 }
 0x2b6   : > { %v1169_v53 = vadd.f32 %v2770_v57, %v1168_v52  ;;  %v1292_v55 = vmax.f32 %v1166_v49, 0.0 }
 0x2b7   : > { %v1295_v54 = vmax.f32 %v1177_v51, 0.0 }
 0x2b8   : > { %v1293_v58 = vmax.f32 %v1169_v53, 0.0 }
 0x2b9   : > { %v1389_v59 = vpack.c.bf16 %v1295_v54, %v1294_v1 }
 0x2ba   : > { %v1388_v60 = vpack.c.bf16 %v1293_v58, %v1292_v55  ;;  %v2159_v61 = vpop.f32.mrb[36].mxu0 }
 0x2bb   : > { %v1190_v62 = vadd.f32 %v2159_v61, %v2770_v57  ;;  %v1181_v63 = vpop.f32.mrb[37].mxu0 }
 0x2bc   : > { %v1182_v0 = vadd.f32 %v2770_v57, %v1181_v63  ;;  %v2160_v2 = vpop.f32.mrb[38].mxu0  ;;  %2201 = vmatprep.mubr.bf16.mxu0 %v1388_v60 }
 0x2bd   : > { %v1193_v56 = vadd.f32 %v2160_v2, %v2770_v57  ;;  %v1184_v3 = vpop.f32.mrb[39].mxu0  ;;  %2202 = vmatmul.mubr.bf16.vlgmr.msra.gmra.mrb[64].mxu0 %v1389_v59  ;;  %v1298_v5 = vmax.f32 %v1190_v62, 0.0 }
 0x2be   : > { %v1185_v4 = vadd.f32 %v2770_v57, %v1184_v3  ;;  %v1296_v7 = vmax.f32 %v1182_v0, 0.0 }
 0x2bf   : > { %v1299_v6 = vmax.f32 %v1193_v56, 0.0 }
 0x2c0   : > { %v1297_v8 = vmax.f32 %v1185_v4, 0.0 }
 0x2c1   : > { %v1391_v9 = vpack.c.bf16 %v1299_v6, %v1298_v5 }
 0x2c2   : > { %v1390_v10 = vpack.c.bf16 %v1297_v8, %v1296_v7  ;;  %v2163_v11 = vpop.f32.mrb[40].mxu0 }
 0x2c3   : > { %v1206_v12 = vadd.f32 %v2163_v11, %v2770_v57  ;;  %v1197_v13 = vpop.f32.mrb[41].mxu0 }
 0x2c4   : > { %v1198_v14 = vadd.f32 %v2770_v57, %v1197_v13  ;;  %v2164_v15 = vpop.f32.mrb[42].mxu0  ;;  %2205 = vmatprep.mubr.bf16.mxu1 %v1390_v10 }
 0x2c5   : > { %v1209_v16 = vadd.f32 %v2164_v15, %v2770_v57  ;;  %v1200_v17 = vpop.f32.mrb[43].mxu0  ;;  %2206 = vmatmul.mubr.bf16.vlgmr.msra.gmra.mrb[32].mxu1 %v1391_v9  ;;  %v1302_v19 = vmax.f32 %v1206_v12, 0.0 }
 0x2c6   : > { %v1201_v18 = vadd.f32 %v2770_v57, %v1200_v17  ;;  %v1300_v21 = vmax.f32 %v1198_v14, 0.0 }
 0x2c7   : > { %v1303_v20 = vmax.f32 %v1209_v16, 0.0 }
 0x2c8   : > { %v1301_v22 = vmax.f32 %v1201_v18, 0.0 }
 0x2c9   : > { %v1393_v23 = vpack.c.bf16 %v1303_v20, %v1302_v19 }
 0x2ca   : > { %v1392_v24 = vpack.c.bf16 %v1301_v22, %v1300_v21  ;;  %v2167_v25 = vpop.f32.mrb[44].mxu0 }
 0x2cb   : > { %v1222_v26 = vadd.f32 %v2167_v25, %v2770_v57  ;;  %v1213_v27 = vpop.f32.mrb[45].mxu0 }
 0x2cc   : > { %v1214_v28 = vadd.f32 %v2770_v57, %v1213_v27  ;;  %v2168_v29 = vpop.f32.mrb[46].mxu0  ;;  %2209 = vmatprep.mubr.bf16.mxu1 %v1392_v24 }
 0x2cd   : > { %v1225_v30 = vadd.f32 %v2168_v29, %v2770_v57  ;;  %v1216_v31 = vpop.f32.mrb[47].mxu0  ;;  %2210 = vmatmul.mubr.bf16.gmra.mrb[36].mxu1 %v1393_v23  ;;  %v1306_v33 = vmax.f32 %v1222_v26, 0.0 }
 0x2ce   : > { %v1217_v32 = vadd.f32 %v2770_v57, %v1216_v31  ;;  %v1304_v35 = vmax.f32 %v1214_v28, 0.0 }
 0x2cf   : > { %v1307_v34 = vmax.f32 %v1225_v30, 0.0 }
 0x2d0   : > { %v1305_v36 = vmax.f32 %v1217_v32, 0.0  ;;  %v2808_v32 = vld [vmem:[%s442_s17] ss:$0 sm:$0xff] }
 0x2d1   : > { %v1395_v37 = vpack.c.bf16 %v1307_v34, %v1306_v33 }
 0x2d2   : > { %v1394_v38 = vpack.c.bf16 %v1305_v36, %v1304_v35  ;;  %v2171_v39 = vpop.f32.mrb[48].mxu0 }
 0x2d3   : > { %v1238_v40 = vadd.f32 %v2171_v39, %v2770_v57  ;;  %v1229_v41 = vpop.f32.mrb[49].mxu0 }
 0x2d4   : > { %v1230_v42 = vadd.f32 %v2770_v57, %v1229_v41  ;;  %v2172_v43 = vpop.f32.mrb[50].mxu0  ;;  %2213 = vmatprep.mubr.bf16.mxu1 %v1394_v38 }
 0x2d5   : > { %v1241_v44 = vadd.f32 %v2172_v43, %v2770_v57  ;;  %v1232_v45 = vpop.f32.mrb[51].mxu0  ;;  %2214 = vmatmul.mubr.bf16.gmra.mrb[40].mxu1 %v1395_v37  ;;  %v1310_v47 = vmax.f32 %v1238_v40, 0.0 }
 0x2d6   : > { %v1233_v46 = vadd.f32 %v2770_v57, %v1232_v45  ;;  %v1308_v49 = vmax.f32 %v1230_v42, 0.0 }
 0x2d7   : > { %v1311_v48 = vmax.f32 %v1241_v44, 0.0 }
 0x2d8   : > { %v1309_v50 = vmax.f32 %v1233_v46, 0.0 }
 0x2d9   : > { %v1397_v51 = vpack.c.bf16 %v1311_v48, %v1310_v47 }
 0x2da   : > { %v1396_v52 = vpack.c.bf16 %v1309_v50, %v1308_v49  ;;  %v2175_v53 = vpop.f32.mrb[52].mxu0 }
 0x2db   : > { %v1254_v1 = vadd.f32 %v2175_v53, %v2770_v57  ;;  %v1245_v54 = vpop.f32.mrb[53].mxu0 }
 0x2dc   : > { %v1246_v55 = vadd.f32 %v2770_v57, %v1245_v54  ;;  %v2176_v58 = vpop.f32.mrb[54].mxu0  ;;  %2217 = vmatprep.mubr.bf16.mxu1 %v1396_v52 }
 0x2dd   : > { %v1257_v59 = vadd.f32 %v2176_v58, %v2770_v57  ;;  %v1248_v60 = vpop.f32.mrb[55].mxu0  ;;  %2218 = vmatmul.mubr.bf16.gmra.mrb[44].mxu1 %v1397_v51  ;;  %v1314_v62 = vmax.f32 %v1254_v1, 0.0 }
 0x2de   : > { %v1249_v61 = vadd.f32 %v2770_v57, %v1248_v60  ;;  %v1312_v0 = vmax.f32 %v1246_v55, 0.0 }
 0x2df   : > { %v1315_v63 = vmax.f32 %v1257_v59, 0.0 }
 0x2e0   : > { %v1313_v2 = vmax.f32 %v1249_v61, 0.0 }
 0x2e1   : > { %v1399_v56 = vpack.c.bf16 %v1315_v63, %v1314_v62 }
 0x2e2   : > { %v1398_v3 = vpack.c.bf16 %v1313_v2, %v1312_v0  ;;  %v2179_v4 = vpop.f32.mrb[56].mxu0 }
 0x2e3   : > { %v1270_v5 = vadd.f32 %v2179_v4, %v2770_v57  ;;  %v1261_v6 = vpop.f32.mrb[57].mxu0 }
 0x2e4   : > { %v1262_v7 = vadd.f32 %v2770_v57, %v1261_v6  ;;  %v2180_v8 = vpop.f32.mrb[58].mxu0  ;;  %2221 = vmatprep.mubr.bf16.mxu1 %v1398_v3 }
 0x2e5   : > { %v1273_v9 = vadd.f32 %v2180_v8, %v2770_v57  ;;  %v1264_v10 = vpop.f32.mrb[59].mxu0  ;;  %2222 = vmatmul.mubr.bf16.gmra.mrb[48].mxu1 %v1399_v56  ;;  %v1318_v12 = vmax.f32 %v1270_v5, 0.0 }
 0x2e6   : > { %v1265_v11 = vadd.f32 %v2770_v57, %v1264_v10  ;;  %v1316_v14 = vmax.f32 %v1262_v7, 0.0 }
 0x2e7   : > { %v1319_v13 = vmax.f32 %v1273_v9, 0.0 }
 0x2e8   : > { %v1317_v15 = vmax.f32 %v1265_v11, 0.0 }
 0x2e9   : > { %v1401_v16 = vpack.c.bf16 %v1319_v13, %v1318_v12 }
 0x2ea   : > { %v1400_v17 = vpack.c.bf16 %v1317_v15, %v1316_v14  ;;  %v2183_v18 = vpop.f32.mrb[60].mxu0 }
 0x2eb   : > { %v1286_v19 = vadd.f32 %v2183_v18, %v2770_v57  ;;  %v1277_v20 = vpop.f32.mrb[61].mxu0 }
 0x2ec   : > { %v1278_v21 = vadd.f32 %v2770_v57, %v1277_v20  ;;  %v2184_v22 = vpop.f32.mrb[62].mxu0  ;;  %2225 = vmatprep.mubr.bf16.mxu1 %v1400_v17 }
 0x2ed   : > { %v1289_v23 = vadd.f32 %v2184_v22, %v2770_v57  ;;  %v1280_v24 = vpop.f32.mrb[63].mxu0  ;;  %2226 = vmatmul.mubr.bf16.gmra.mrb[52].mxu1 %v1401_v16  ;;  %v1322_v26 = vmax.f32 %v1286_v19, 0.0 }
 0x2ee   : > { %v1281_v25 = vadd.f32 %v2770_v57, %v1280_v24  ;;  %v1320_v28 = vmax.f32 %v1278_v21, 0.0 }
 0x2ef   : > { %v1323_v27 = vmax.f32 %v1289_v23, 0.0 }
 0x2f0   : > { %v1321_v29 = vmax.f32 %v1281_v25, 0.0 }
 0x2f1   : > { %v1403_v30 = vpack.c.bf16 %v1323_v27, %v1322_v26 }
 0x2f2   : > { %v1402_v31 = vpack.c.bf16 %v1321_v29, %v1320_v28 }
 0x2f4   : > { %2229 = vmatprep.mubr.bf16.mxu1 %v1402_v31 }
 0x2f5   : > { %2230 = vmatmul.mubr.bf16.gmra.mrb[56].mxu1 %v1403_v30 }
 0x390   : > { %v2203_v33 = vpop.f32.mrb[64].mxu0 }
 0x391   : > { %v1518_v34 = vadd.f32 %v2203_v33, %v2808_v32  ;;  %v1509_v57 = vpop.f32.mrb[65].mxu0 }
 0x392   : > { %v1510_v35 = vadd.f32 %v2808_v32, %v1509_v57  ;;  %v2204_v36 = vpop.f32.mrb[66].mxu0 }
 0x393   : > { %2332 = vtanh.f32 %v1518_v34  ;;  %v1521_v37 = vadd.f32 %v2204_v36, %v2808_v32  ;;  %v1512_v38 = vpop.f32.mrb[67].mxu0 }
 0x394   : > { %2334 = vtanh.f32 %v1510_v35  ;;  %v1513_v39 = vadd.f32 %v2808_v32, %v1512_v38 }
 0x395   : > { %2336 = vtanh.f32 %v1521_v37 }
 0x396   : > { %2338 = vtanh.f32 %v1513_v39 }
 0x398   : > { %v2207_v40 = vpop.f32.mrb[32].mxu1 }
 0x399   : > { %v1534_v41 = vadd.f32 %v2207_v40, %v2808_v32  ;;  %v1525_v42 = vpop.f32.mrb[33].mxu1 }
 0x39a   : > { %v1526_v43 = vadd.f32 %v2808_v32, %v1525_v42  ;;  %v2208_v44 = vpop.f32.mrb[34].mxu1 }
 0x39b   : > { %2340 = vtanh.f32 %v1534_v41  ;;  %v1537_v45 = vadd.f32 %v2208_v44, %v2808_v32  ;;  %v1528_v46 = vpop.f32.mrb[35].mxu1 }
 0x39c   : > { %2342 = vtanh.f32 %v1526_v43  ;;  %v1529_v47 = vadd.f32 %v2808_v32, %v1528_v46 }
 0x39d   : > { %v2333_v48 = vpop.eup %2332  ;;  %2344 = vtanh.f32 %v1537_v45 }
 0x39e   : > { %v2335_v49 = vpop.eup %2334  ;;  %1670 = vst [vmem:[%s2821_s19 + $0x10] sm:$0xff] %v2333_v48  ;;  %2346 = vtanh.f32 %v1529_v47 }
 0x39f   : > { %v2337_v50 = vpop.eup %2336  ;;  %1668 = vst [vmem:[%s2821_s19] sm:$0xff] %v2335_v49 }
 0x3a0   : > { %v2339_v51 = vpop.eup %2338  ;;  %1671 = vst [vmem:[%s2821_s19 + $0x18] sm:$0xff] %v2337_v50  ;;  %v2211_v52 = vpop.f32.mrb[36].mxu1 }
 0x3a1   : > { %1669 = vst [vmem:[%s2821_s19 + $0x8] sm:$0xff] %v2339_v51  ;;  %v1550_v53 = vadd.f32 %v2211_v52, %v2808_v32  ;;  %v1541_v1 = vpop.f32.mrb[37].mxu1 }
 0x3a2   : > { %v1542_v54 = vadd.f32 %v2808_v32, %v1541_v1  ;;  %v2212_v55 = vpop.f32.mrb[38].mxu1 }
 0x3a3   : > { %2348 = vtanh.f32 %v1550_v53  ;;  %v1553_v58 = vadd.f32 %v2212_v55, %v2808_v32  ;;  %v1544_v59 = vpop.f32.mrb[39].mxu1 }
 0x3a4   : > { %2350 = vtanh.f32 %v1542_v54  ;;  %v1545_v60 = vadd.f32 %v2808_v32, %v1544_v59 }
 0x3a5   : > { %v2341_v61 = vpop.eup %2340  ;;  %2352 = vtanh.f32 %v1553_v58 }
 0x3a6   : > { %v2343_v62 = vpop.eup %2342  ;;  %1674 = vst [vmem:[%s2821_s19 + $0x30] sm:$0xff] %v2341_v61  ;;  %2354 = vtanh.f32 %v1545_v60 }
 0x3a7   : > { %v2345_v63 = vpop.eup %2344  ;;  %1672 = vst [vmem:[%s2821_s19 + $0x20] sm:$0xff] %v2343_v62 }
 0x3a8   : > { %v2347_v0 = vpop.eup %2346  ;;  %1675 = vst [vmem:[%s2821_s19 + $0x38] sm:$0xff] %v2345_v63  ;;  %v2215_v2 = vpop.f32.mrb[40].mxu1 }
 0x3a9   : > { %1673 = vst [vmem:[%s2821_s19 + $0x28] sm:$0xff] %v2347_v0  ;;  %v1566_v56 = vadd.f32 %v2215_v2, %v2808_v32  ;;  %v1557_v3 = vpop.f32.mrb[41].mxu1 }
 0x3aa   : > { %v1558_v4 = vadd.f32 %v2808_v32, %v1557_v3  ;;  %v2216_v5 = vpop.f32.mrb[42].mxu1 }
 0x3ab   : > { %2356 = vtanh.f32 %v1566_v56  ;;  %v1569_v6 = vadd.f32 %v2216_v5, %v2808_v32  ;;  %v1560_v7 = vpop.f32.mrb[43].mxu1 }
 0x3ac   : > { %2358 = vtanh.f32 %v1558_v4  ;;  %v1561_v8 = vadd.f32 %v2808_v32, %v1560_v7 }
 0x3ad   : > { %v2349_v9 = vpop.eup %2348  ;;  %2360 = vtanh.f32 %v1569_v6 }
 0x3ae   : > { %v2351_v10 = vpop.eup %2350  ;;  %1678 = vst [vmem:[%s2821_s19 + $0x50] sm:$0xff] %v2349_v9  ;;  %2362 = vtanh.f32 %v1561_v8 }
 0x3af   : > { %v2353_v11 = vpop.eup %2352  ;;  %1676 = vst [vmem:[%s2821_s19 + $0x40] sm:$0xff] %v2351_v10 }
 0x3b0   : > { %v2355_v12 = vpop.eup %2354  ;;  %1679 = vst [vmem:[%s2821_s19 + $0x58] sm:$0xff] %v2353_v11  ;;  %v2219_v13 = vpop.f32.mrb[44].mxu1 }
 0x3b1   : > { %1677 = vst [vmem:[%s2821_s19 + $0x48] sm:$0xff] %v2355_v12  ;;  %v1582_v14 = vadd.f32 %v2219_v13, %v2808_v32  ;;  %v1573_v15 = vpop.f32.mrb[45].mxu1 }
 0x3b2   : > { %v1574_v16 = vadd.f32 %v2808_v32, %v1573_v15  ;;  %v2220_v17 = vpop.f32.mrb[46].mxu1 }
 0x3b3   : > { %2364 = vtanh.f32 %v1582_v14  ;;  %v1585_v18 = vadd.f32 %v2220_v17, %v2808_v32  ;;  %v1576_v19 = vpop.f32.mrb[47].mxu1 }
 0x3b4   : > { %2366 = vtanh.f32 %v1574_v16  ;;  %v1577_v20 = vadd.f32 %v2808_v32, %v1576_v19 }
 0x3b5   : > { %v2357_v21 = vpop.eup %2356  ;;  %2368 = vtanh.f32 %v1585_v18 }
 0x3b6   : > { %v2359_v22 = vpop.eup %2358  ;;  %1682 = vst [vmem:[%s2821_s19 + $0x70] sm:$0xff] %v2357_v21  ;;  %2370 = vtanh.f32 %v1577_v20 }
 0x3b7   : > { %v2361_v23 = vpop.eup %2360  ;;  %1680 = vst [vmem:[%s2821_s19 + $0x60] sm:$0xff] %v2359_v22 }
 0x3b8   : > { %v2363_v24 = vpop.eup %2362  ;;  %1683 = vst [vmem:[%s2821_s19 + $0x78] sm:$0xff] %v2361_v23  ;;  %v2223_v25 = vpop.f32.mrb[48].mxu1 }
 0x3b9   : > { %1681 = vst [vmem:[%s2821_s19 + $0x68] sm:$0xff] %v2363_v24  ;;  %v1598_v26 = vadd.f32 %v2223_v25, %v2808_v32  ;;  %v1589_v27 = vpop.f32.mrb[49].mxu1 }
 0x3ba   : > { %v1590_v28 = vadd.f32 %v2808_v32, %v1589_v27  ;;  %v2224_v29 = vpop.f32.mrb[50].mxu1 }
 0x3bb   : > { %2372 = vtanh.f32 %v1598_v26  ;;  %v1601_v30 = vadd.f32 %v2224_v29, %v2808_v32  ;;  %v1592_v31 = vpop.f32.mrb[51].mxu1 }
 0x3bc   : > { %2374 = vtanh.f32 %v1590_v28  ;;  %v1593_v33 = vadd.f32 %v2808_v32, %v1592_v31 }
 0x3bd   : > { %v2365_v34 = vpop.eup %2364  ;;  %2376 = vtanh.f32 %v1601_v30 }
 0x3be   : > { %v2367_v57 = vpop.eup %2366  ;;  %1686 = vst [vmem:[%s2821_s19 + $0x90] sm:$0xff] %v2365_v34  ;;  %2378 = vtanh.f32 %v1593_v33 }
 0x3bf   : > { %v2369_v35 = vpop.eup %2368  ;;  %1684 = vst [vmem:[%s2821_s19 + $0x80] sm:$0xff] %v2367_v57 }
 0x3c0   : > { %v2371_v36 = vpop.eup %2370  ;;  %1687 = vst [vmem:[%s2821_s19 + $0x98] sm:$0xff] %v2369_v35  ;;  %v2227_v37 = vpop.f32.mrb[52].mxu1 }
 0x3c1   : > { %1685 = vst [vmem:[%s2821_s19 + $0x88] sm:$0xff] %v2371_v36  ;;  %v1614_v38 = vadd.f32 %v2227_v37, %v2808_v32  ;;  %v1605_v39 = vpop.f32.mrb[53].mxu1 }
 0x3c2   : > { %v1606_v40 = vadd.f32 %v2808_v32, %v1605_v39  ;;  %v2228_v41 = vpop.f32.mrb[54].mxu1 }
 0x3c3   : > { %2380 = vtanh.f32 %v1614_v38  ;;  %v1617_v42 = vadd.f32 %v2228_v41, %v2808_v32  ;;  %v1608_v43 = vpop.f32.mrb[55].mxu1 }
 0x3c4   : > { %2382 = vtanh.f32 %v1606_v40  ;;  %v1609_v44 = vadd.f32 %v2808_v32, %v1608_v43 }
 0x3c5   : > { %v2373_v45 = vpop.eup %2372  ;;  %2384 = vtanh.f32 %v1617_v42 }
 0x3c6   : > { %v2375_v46 = vpop.eup %2374  ;;  %1690 = vst [vmem:[%s2821_s19 + $0xb0] sm:$0xff] %v2373_v45  ;;  %2386 = vtanh.f32 %v1609_v44 }
 0x3c7   : > { %v2377_v47 = vpop.eup %2376  ;;  %1688 = vst [vmem:[%s2821_s19 + $0xa0] sm:$0xff] %v2375_v46 }
 0x3c8   : > { %v2379_v48 = vpop.eup %2378  ;;  %1691 = vst [vmem:[%s2821_s19 + $0xb8] sm:$0xff] %v2377_v47  ;;  %v2231_v49 = vpop.f32.mrb[56].mxu1 }
 0x3c9   : > { %1689 = vst [vmem:[%s2821_s19 + $0xa8] sm:$0xff] %v2379_v48  ;;  %v1630_v50 = vadd.f32 %v2231_v49, %v2808_v32  ;;  %v1621_v51 = vpop.f32.mrb[57].mxu1 }
 0x3ca   : > { %v1622_v52 = vadd.f32 %v2808_v32, %v1621_v51  ;;  %v2232_v53 = vpop.f32.mrb[58].mxu1 }
 0x3cb   : > { %2388 = vtanh.f32 %v1630_v50  ;;  %v1633_v1 = vadd.f32 %v2232_v53, %v2808_v32  ;;  %v1624_v54 = vpop.f32.mrb[59].mxu1 }
 0x3cc   : > { %2390 = vtanh.f32 %v1622_v52  ;;  %v1625_v55 = vadd.f32 %v2808_v32, %v1624_v54 }
 0x3cd   : > { %v2381_v58 = vpop.eup %2380  ;;  %2392 = vtanh.f32 %v1633_v1 }
 0x3ce   : > { %v2383_v59 = vpop.eup %2382  ;;  %1694 = vst [vmem:[%s2821_s19 + $0xd0] sm:$0xff] %v2381_v58  ;;  %2394 = vtanh.f32 %v1625_v55 }
 0x3cf   : > { %v2385_v60 = vpop.eup %2384  ;;  %1692 = vst [vmem:[%s2821_s19 + $0xc0] sm:$0xff] %v2383_v59 }
 0x3d0   : > { %v2387_v61 = vpop.eup %2386  ;;  %1695 = vst [vmem:[%s2821_s19 + $0xd8] sm:$0xff] %v2385_v60 }
 0x3d1   : > { %1693 = vst [vmem:[%s2821_s19 + $0xc8] sm:$0xff] %v2387_v61 }
 0x3d5   : > { %v2389_v62 = vpop.eup %2388 }
 0x3d6   : > { %v2391_v63 = vpop.eup %2390  ;;  %1698 = vst [vmem:[%s2821_s19 + $0xf0] sm:$0xff] %v2389_v62 }
 0x3d7   : > { %v2393_v32 = vpop.eup %2392  ;;  %1696 = vst [vmem:[%s2821_s19 + $0xe0] sm:$0xff] %v2391_v63 }
 0x3d8   : > { %v2395_v0 = vpop.eup %2394  ;;  %1699 = vst [vmem:[%s2821_s19 + $0xf8] sm:$0xff] %v2393_v32 }
 0x3d9   : > { %1697 = vst [vmem:[%s2821_s19 + $0xe8] sm:$0xff] %v2395_v0 }
 0x3da   : > { %2409 = shalt.err (!%p2406_p5)
}
 0x3db   : > { %s2410_s17 = scalar_lea.hbm %s2881_s30, 4096  ;;  %s2414_s19 = scalar_lea.hbm %s2943_s7, 8192 }
 0x3dc   : > { %p2411_p6 = scmp.ne.s32.totalorder %s2881_s30, %s2410_s17  ;;  %p2415_p10 = scmp.lt.u32.totalorder %s2881_s30, %s2943_s7 }
 0x3dd   : > { %p2416_p11 = scmp.lt.u32.totalorder %s2414_s19, %s2410_s17  ;;  %p2418_p13 = scmp.lt.u32.totalorder %s2410_s17, %s2881_s30 }
 0x3de   : > { %p2412_p7 = pnand %p2411_p6, %p2559_p4 }
 0x3df   : > { %p2417_p12 = por %p2416_p11, %p2415_p10 }
 0x3e0   : > { %p2413_p9 = pneg %p2412_p7 }
 0x3e1   : > { %p2419_p0 = por %p2418_p13, %p2417_p12 }
 0x3e3   : > { %p2420_p1 = pnand %p2419_p0, %p2413_p9 }
 0x3e5   : > { %2423 = shalt.err (!%p2420_p1)
}
 0x3e6   : > { %s2477_s23 = smov 128   ;;  %s2478_s8 = smov 8  }
 0x3e7   : > { %2249 = dma.vmem_to_hbm [thread:$0]  (%p2559_p4), %s2883_s21, 4096, %s2881_s30, %s2890_s27, %s2477_s23, %s2477_s23, %s2478_s8  }
 0x3e8 PF: > { %p2255_p2 = scmp.ge.s32.totalorder %s2474_s29, 2  ;;  %s1732_s10 = sand.u32 1, %s2454_s24  }
 0x3e9   : > { %s1733_s12 = scalar_lea.sflag [#allocation4], %s1732_s10 }
 0x3ea   : > { %p2252_p3 = pnand %p2255_p2, %p2566_p8 }
 0x3ec   : > { %2449 = dma.done.wait (!%p2252_p3), %s1733_s12, 4096  }
 0x3ed   : > { %2451 = vsyncadd (!%p2252_p3), %s1733_s12, 4294963200  ;;  %s20_s29 = sadd.s32 1, %s2474_s29   ;;  %s2946_s24 = smov %s2458_s25 }
 0x3ee   : > { %p17_p5 = scmp.ge.s32.totalorder %s20_s29, 4   ;;  %s2947_s25 = smov %s2462_s26 }
 0x3ef   : > { %s2948_s26 = smov %s2572_s14  ;;  %s2949_s27 = smov %s2470_s28 }
 0x3f0   : > { %s2950_s28 = smov %s2952_s9  ;;  %19 = sbr.rel (!%p17_p5) target bundleno = 4 (0x4), region = 107 }
 0x3f7   :  { %1738 = vsyncpa [#allocation4], 1 }
 0x3f8   :  { %1740 = vsyncpa [#allocation4 + $0x1], 1 }

</bundles_post_ra>
